<compile_context>
chip_gen: v7x
topology: tpu7x:2x2x1
jax: 0.10.0
libtpu: 0.0.40
codegen_flags: <defaults>
</compile_context>

<pallas_src>
import math
import functools

import jax
import jax.numpy as jnp
from jax.experimental import pallas as pl
from jax.experimental.pallas import tpu as pltpu

VMEM_SPEC = pl.BlockSpec(memory_space=pltpu.MemorySpace.VMEM)


# ---------------------------------------------------------------- Pallas kernels

def _graphconv_kernel_factory(din):
    """GraphConv + ReLU + TopK scoring gate, fused.

    Inputs : x (N,din), adj (N,N), mask_row (N,1), mask_col (1,N),
             w_stacked (2*din, F) = [W_rel; W_root], b (1,F), p_norm (F,1) = p/||p||
    Outputs: h (N,F) = relu(A_m @ x @ W_rel + x @ W_root + b),  gate (N,1) = tanh(h @ p_norm)
    """
    fuse_k = (din % 128 == 0)  # lane-aligned concat -> single K=2*din MXU pass (layers 2/3: K=256)

    def kernel(x_ref, adj_ref, mrow_ref, mcol_ref, w_ref, b_ref, p_ref, h_ref, g_ref):
        x = x_ref[...]
        # edge filtering of previous pooling layers == mask rows+cols of the dense adjacency
        adj = adj_ref[...] * mrow_ref[...] * mcol_ref[...]
        agg = jnp.dot(adj, x, preferred_element_type=jnp.float32)          # neighbor sum
        if fuse_k:
            xin = jnp.concatenate([agg, x], axis=-1)                        # (N, 2*din), 128-aligned
            pre = jnp.dot(xin, w_ref[...], preferred_element_type=jnp.float32)
        else:
            pre = (jnp.dot(agg, w_ref[:din, :], preferred_element_type=jnp.float32)
                   + jnp.dot(x, w_ref[din:, :], preferred_element_type=jnp.float32))
        h = jnp.maximum(pre + b_ref[...], 0.0)                               # fused F.relu
        h_ref[...] = h
        # TopKPooling scoring gate on data already in vregs (p_norm pre-normalized in JAX)
        g_ref[...] = jnp.tanh(jnp.dot(h, p_ref[...], preferred_element_type=jnp.float32))

    return kernel


def graphconv_relu_score(x, adj, mask_row, mask_col, w_stacked, b, p_norm):
    n, din = x.shape
    f_out = w_stacked.shape[1]
    return pl.pallas_call(
        _graphconv_kernel_factory(din),
        out_shape=(jax.ShapeDtypeStruct((n, f_out), jnp.float32),
                   jax.ShapeDtypeStruct((n, 1), jnp.float32)),
        in_specs=[VMEM_SPEC] * 7,
        out_specs=(VMEM_SPEC, VMEM_SPEC),
    )(x, adj, mask_row, mask_col, w_stacked, b, p_norm)


def _gate_readout_kernel(h_ref, g_ref, m_ref, hg_ref, r_ref):
    h = h_ref[...]                      # (B, n, F)
    g = g_ref[...]                      # (B, n, 1)  tanh gate
    m = m_ref[...]                      # (B, n, 1)  float keep-mask
    f = h.shape[-1]
    hg = h * g * m                      # x[perm] * score[perm]  (dropped nodes zeroed)
    hg_ref[...] = hg                    # next layer's node features (stays fused, no extra HBM trip)
    xmax = jnp.max(jnp.where(m > 0.0, hg, jnp.float32(-1e30)), axis=1)      # gmp
    cnt = jnp.sum(m, axis=1)                                                # (B, 1), >= 1
    xmean = jnp.sum(hg, axis=1) * pl.reciprocal(cnt, approx=True)           # gap (EUP vrcp)
    # write the two halves directly; both slices start on a 128-lane boundary (F=128)
    r_ref[:, :f] = xmax
    r_ref[:, f:] = xmean


def gate_readout(h3, gate3, mask3):
    b, n, f = h3.shape
    return pl.pallas_call(
        _gate_readout_kernel,
        out_shape=(jax.ShapeDtypeStruct((b, n, f), jnp.float32),
                   jax.ShapeDtypeStruct((b, 2 * f), jnp.float32)),
        in_specs=[VMEM_SPEC] * 3,
        out_specs=(VMEM_SPEC, VMEM_SPEC),
    )(h3, gate3, mask3)


def _make_mlp_kernel(n_layers):
    def kernel(*refs):
        z_ref, o_ref = refs[0], refs[-1]
        z = z_ref[...]
        for i in range(n_layers):
            w_ref = refs[1 + 2 * i]
            b_ref = refs[2 + 2 * i]
            z = jnp.dot(z, w_ref[...], preferred_element_type=jnp.float32) + b_ref[...]
            if i < n_layers - 1:
                # silu: x * sigmoid(x); divide on the (idle) EUP slot
                z = z * pl.reciprocal(1.0 + jnp.exp(-z), approx=True)
                # F.dropout(p=0.5, training=False) -> identity at inference
        z = z - jnp.max(z, axis=1, keepdims=True)
        o_ref[...] = z - jnp.log(jnp.sum(jnp.exp(z), axis=1, keepdims=True))   # log_softmax(dim=1)
    return kernel


def mlp_head(z, layers):
    flat = []
    for (w, b) in layers:
        flat += [w, b]
    out_dim = layers[-1][0].shape[1]
    return pl.pallas_call(
        _make_mlp_kernel(len(layers)),
        out_shape=jax.ShapeDtypeStruct((z.shape[0], out_dim), jnp.float32),
        in_specs=[VMEM_SPEC] * (1 + len(flat)),
        out_specs=VMEM_SPEC,
    )(z, *flat)


# ---------------------------------------------------------------- params / model glue

def init_params(key, num_features, hidden, width, num_classes):
    ks = iter(jax.random.split(key, 64))

    def lin(din, dout, bias=True):
        s = 1.0 / math.sqrt(din)
        w = jax.random.uniform(next(ks), (din, dout), jnp.float32, -s, s)
        b = jax.random.uniform(next(ks), (1, dout), jnp.float32, -s, s) if bias else None
        return w, b

    params = {}
    for i, din in enumerate([num_features, hidden, hidden]):
        w_rel, b = lin(din, hidden)
        w_root, _ = lin(din, hidden, bias=False)     # PyG GraphConv lin_root has no bias
        # pre-stack so the kernel does one [agg, x] @ [W_rel; W_root] MXU pass (K = 2*din)
        params[f"conv{i + 1}"] = {"w": jnp.concatenate([w_rel, w_root], axis=0), "b": b}
        p = jax.random.uniform(next(ks), (hidden,), jnp.float32, -1.0, 1.0)
        params[f"pool{i + 1}"] = (p / jnp.sqrt(jnp.sum(p * p))).reshape(hidden, 1)  # pre-normalized
    dims = [2 * hidden] + list(width) + [num_classes]
    params["mlp"] = [lin(dims[i], dims[i + 1]) for i in range(len(dims) - 1)]
    return params


def forward(params, x, src, dst, B, n_per, ratio=0.8):
    """Inference forward pass of topk_pool_Net."""
    N = x.shape[0]
    hidden = params["conv1"]["w"].shape[1]

    # dense adjacency built ONCE: A[dst, src] += 1 ; per-layer edge filtering is a mask multiply
    adj_full = jnp.zeros((N, N), jnp.float32).at[dst, src].add(1.0)

    node_mask = jnp.ones((N,), bool)     # nodes still alive after previous pooling layers
    m = n_per                            # nodes currently kept per graph (static)
    graph_ids = jnp.arange(B)[:, None]

    readouts = []
    h = x
    for layer in range(3):
        cp = params[f"conv{layer + 1}"]
        maskf = node_mask.astype(jnp.float32)
        h, gate = graphconv_relu_score(                                     # Pallas (fused)
            h, adj_full, maskf.reshape(N, 1), maskf.reshape(1, N),
            cp["w"], cp["b"], params[f"pool{layer + 1}"])

        # ---- TopKPooling per-graph top-k selection (index glue stays in JAX) ----
        k = int(math.ceil(ratio * m))
        sb = jnp.where(node_mask, gate[:, 0], -jnp.inf).reshape(B, n_per)
        top_idx = jnp.argsort(-sb, axis=1)[:, :k]
        keep = jnp.zeros((B, n_per), bool).at[graph_ids, top_idx].set(True)
        node_mask = keep.reshape(-1) & node_mask
        m = k

        # ---- fused gating (x[perm]*score[perm]) + global max/mean readout ----
        hg, xr = gate_readout(h.reshape(B, n_per, hidden),                  # Pallas (fused)
                              gate.reshape(B, n_per, 1),
                              node_mask.reshape(B, n_per, 1).astype(jnp.float32))
        h = hg.reshape(N, hidden)
        readouts.append(xr)

    z = readouts[0] + readouts[1] + readouts[2]                             # x = x1 + x2 + x3
    return mlp_head(z, params["mlp"])                                       # Pallas (single fused head)


# ---------------------------------------------------------------- main

if __name__ == "__main__":
    NUM_FEATURES = 16      # datasetroot.num_features
    NUM_CLASSES = 4        # datasetroot.num_classes
    HIDDEN = 128
    WIDTH = [32, 32]
    B = 2                  # graphs in the batch
    N_PER = 16             # nodes per graph
    N = B * N_PER

    key = jax.random.PRNGKey(0)
    k_param, k_x = jax.random.split(key)

    params = init_params(k_param, NUM_FEATURES, HIDDEN, WIDTH, NUM_CLASSES)

    # node features (data.x)
    x = jax.random.normal(k_x, (N, NUM_FEATURES), jnp.float32)

    # edge_index (data.edge_index): ring (both directions) + a chord, per graph
    edges = []
    for g in range(B):
        o = g * N_PER
        for i in range(N_PER):
            edges.append((o + i, o + (i + 1) % N_PER))
            edges.append((o + (i + 1) % N_PER, o + i))
            edges.append((o + i, o + (i + 3) % N_PER))
    src = jnp.array([e[0] for e in edges], jnp.int32)   # message sources (edge_index[0])
    dst = jnp.array([e[1] for e in edges], jnp.int32)   # message targets (edge_index[1])

    fwd = jax.jit(functools.partial(forward, B=B, n_per=N_PER))
    out = jax.block_until_ready(fwd(params, x, src, dst))

    assert out.shape == (B, NUM_CLASSES)
    assert bool(jnp.all(jnp.isfinite(out)))
    # rows of log_softmax must (exp-)sum to ~1
    assert bool(jnp.allclose(jnp.sum(jnp.exp(out), axis=1), 1.0, atol=1e-4))
    print("KERNEL_OK")
</pallas_src>

<mosaic_0001>
module attributes {stable_mosaic.version = 11 : i64} {
  func.func private @main(%arg0: i32) attributes {dimension_semantics = [#tpu.dimension_semantics<core_parallel>], iteration_bounds = array<i64: 2>, tpu.core_type = #tpu.core_type<sc_scalar_subcore>, window_params = []} {
    return
  }
}

module attributes {stable_mosaic.version = 11 : i64} {
  func.func private @main(%arg0: i32) attributes {dimension_semantics = [#tpu.dimension_semantics<core_parallel>], iteration_bounds = array<i64: 2>, tpu.core_type = #tpu.core_type<sc_scalar_subcore>, window_params = []} {
    return
  }
}

module attributes {stable_mosaic.version = 11 : i64} {
  func.func @kernel(%arg0: memref<32x16xf32, #tpu.memory_space<vmem>>, %arg1: memref<32x32xf32, #tpu.memory_space<vmem>>, %arg2: memref<32x1xf32, #tpu.memory_space<vmem>>, %arg3: memref<1x32xf32, #tpu.memory_space<vmem>>, %arg4: memref<32x128xf32, #tpu.memory_space<vmem>>, %arg5: memref<1x128xf32, #tpu.memory_space<vmem>>, %arg6: memref<128x1xf32, #tpu.memory_space<vmem>>, %arg7: memref<32x128xf32, #tpu.memory_space<vmem>>, %arg8: memref<32x1xf32, #tpu.memory_space<vmem>>) attributes {dimension_semantics = [], scalar_prefetch = 0 : i64, scratch_operands = 0 : i64, tpu.core_type = #tpu.core_type<tc>} {
    %c0 = arith.constant 0 : index
    %c0_0 = arith.constant 0 : index
    %0 = vector.load %arg0[%c0, %c0_0] : memref<32x16xf32, #tpu.memory_space<vmem>>, vector<32x16xf32>
    %c0_1 = arith.constant 0 : index
    %c0_2 = arith.constant 0 : index
    %1 = vector.load %arg1[%c0_1, %c0_2] : memref<32x32xf32, #tpu.memory_space<vmem>>, vector<32x32xf32>
    %c0_3 = arith.constant 0 : index
    %c0_4 = arith.constant 0 : index
    %2 = vector.load %arg2[%c0_3, %c0_4] : memref<32x1xf32, #tpu.memory_space<vmem>>, vector<32x1xf32>
    %3 = vector.broadcast %2 : vector<32x1xf32> to vector<32x32xf32>
    %4 = arith.mulf %1, %3 : vector<32x32xf32>
    %c0_5 = arith.constant 0 : index
    %c0_6 = arith.constant 0 : index
    %5 = vector.load %arg3[%c0_5, %c0_6] : memref<1x32xf32, #tpu.memory_space<vmem>>, vector<1x32xf32>
    %6 = vector.broadcast %5 : vector<1x32xf32> to vector<32x32xf32>
    %7 = arith.mulf %4, %6 : vector<32x32xf32>
    %cst = arith.constant dense<0.000000e+00> : vector<32x16xf32>
    %8 = tpu.matmul %7, %0, %cst {dimension_numbers = #tpu.dot_dimension_numbers<[1], [0], [0], [1], [0, 0, 1, 1], [], []>} : vector<32x32xf32>, vector<32x16xf32>, vector<32x16xf32> -> vector<32x16xf32>
    %c0_7 = arith.constant 0 : index
    %c0_8 = arith.constant 0 : index
    %9 = vector.load %arg4[%c0_7, %c0_8] : memref<32x128xf32, #tpu.memory_space<vmem>>, vector<16x128xf32>
    %cst_9 = arith.constant dense<0.000000e+00> : vector<32x128xf32>
    %10 = tpu.matmul %8, %9, %cst_9 {dimension_numbers = #tpu.dot_dimension_numbers<[1], [0], [0], [1], [0, 0, 1, 1], [], []>} : vector<32x16xf32>, vector<16x128xf32>, vector<32x128xf32> -> vector<32x128xf32>
    %c16 = arith.constant 16 : index
    %c0_10 = arith.constant 0 : index
    %11 = vector.load %arg4[%c16, %c0_10] : memref<32x128xf32, #tpu.memory_space<vmem>>, vector<16x128xf32>
    %cst_11 = arith.constant dense<0.000000e+00> : vector<32x128xf32>
    %12 = tpu.matmul %0, %11, %cst_11 {dimension_numbers = #tpu.dot_dimension_numbers<[1], [0], [0], [1], [0, 0, 1, 1], [], []>} : vector<32x16xf32>, vector<16x128xf32>, vector<32x128xf32> -> vector<32x128xf32>
    %13 = arith.addf %10, %12 : vector<32x128xf32>
    %c0_12 = arith.constant 0 : index
    %c0_13 = arith.constant 0 : index
    %14 = vector.load %arg5[%c0_12, %c0_13] : memref<1x128xf32, #tpu.memory_space<vmem>>, vector<1x128xf32>
    %15 = vector.broadcast %14 : vector<1x128xf32> to vector<32x128xf32>
    %16 = arith.addf %13, %15 : vector<32x128xf32>
    %cst_14 = arith.constant 0.000000e+00 : f32
    %17 = vector.broadcast %cst_14 : f32 to vector<32x128xf32>
    %18 = arith.maximumf %16, %17 : vector<32x128xf32>
    %c0_15 = arith.constant 0 : index
    %c0_16 = arith.constant 0 : index
    %19 = vector.load %arg7[%c0_15, %c0_16] : memref<32x128xf32, #tpu.memory_space<vmem>>, vector<32x128xf32>
    tpu.vector_store %arg7[%c0_15, %c0_16], %18 {strides = array<i32>} : memref<32x128xf32, #tpu.memory_space<vmem>>, vector<32x128xf32>,
    %c0_17 = arith.constant 0 : index
    %c0_18 = arith.constant 0 : index
    %20 = vector.load %arg6[%c0_17, %c0_18] : memref<128x1xf32, #tpu.memory_space<vmem>>, vector<128x1xf32>
    %cst_19 = arith.constant dense<0.000000e+00> : vector<32x1xf32>
    %21 = tpu.matmul %18, %20, %cst_19 {dimension_numbers = #tpu.dot_dimension_numbers<[1], [0], [0], [1], [0, 0, 1, 1], [], []>} : vector<32x128xf32>, vector<128x1xf32>, vector<32x1xf32> -> vector<32x1xf32>
    %22 = math.tanh %21 : vector<32x1xf32>
    %c0_20 = arith.constant 0 : index
    %c0_21 = arith.constant 0 : index
    %23 = vector.load %arg8[%c0_20, %c0_21] : memref<32x1xf32, #tpu.memory_space<vmem>>, vector<32x1xf32>
    tpu.vector_store %arg8[%c0_20, %c0_21], %22 {strides = array<i32>} : memref<32x1xf32, #tpu.memory_space<vmem>>, vector<32x1xf32>,
    return
  }
}

module attributes {stable_mosaic.version = 11 : i64} {
  func.func @_gate_readout_kernel(%arg0: memref<2x16x128xf32, #tpu.memory_space<vmem>>, %arg1: memref<2x16x1xf32, #tpu.memory_space<vmem>>, %arg2: memref<2x16x1xf32, #tpu.memory_space<vmem>>, %arg3: memref<2x16x128xf32, #tpu.memory_space<vmem>>, %arg4: memref<2x256xf32, #tpu.memory_space<vmem>>) attributes {dimension_semantics = [], scalar_prefetch = 0 : i64, scratch_operands = 0 : i64, tpu.core_type = #tpu.core_type<tc>} {
    %c0 = arith.constant 0 : index
    %c0_0 = arith.constant 0 : index
    %c0_1 = arith.constant 0 : index
    %0 = vector.load %arg0[%c0, %c0_0, %c0_1] : memref<2x16x128xf32, #tpu.memory_space<vmem>>, vector<2x16x128xf32>
    %c0_2 = arith.constant 0 : index
    %c0_3 = arith.constant 0 : index
    %c0_4 = arith.constant 0 : index
    %1 = vector.load %arg1[%c0_2, %c0_3, %c0_4] : memref<2x16x1xf32, #tpu.memory_space<vmem>>, vector<2x16x1xf32>
    %c0_5 = arith.constant 0 : index
    %c0_6 = arith.constant 0 : index
    %c0_7 = arith.constant 0 : index
    %2 = vector.load %arg2[%c0_5, %c0_6, %c0_7] : memref<2x16x1xf32, #tpu.memory_space<vmem>>, vector<2x16x1xf32>
    %3 = vector.broadcast %1 : vector<2x16x1xf32> to vector<2x16x128xf32>
    %4 = arith.mulf %0, %3 : vector<2x16x128xf32>
    %5 = vector.broadcast %2 : vector<2x16x1xf32> to vector<2x16x128xf32>
    %6 = arith.mulf %4, %5 : vector<2x16x128xf32>
    %c0_8 = arith.constant 0 : index
    %c0_9 = arith.constant 0 : index
    %c0_10 = arith.constant 0 : index
    %7 = vector.load %arg3[%c0_8, %c0_9, %c0_10] : memref<2x16x128xf32, #tpu.memory_space<vmem>>, vector<2x16x128xf32>
    tpu.vector_store %arg3[%c0_8, %c0_9, %c0_10], %6 {strides = array<i32>} : memref<2x16x128xf32, #tpu.memory_space<vmem>>, vector<2x16x128xf32>,
    %cst = arith.constant 0.000000e+00 : f32
    %8 = vector.broadcast %cst : f32 to vector<2x16x1xf32>
    %9 = arith.cmpf ogt, %2, %8 : vector<2x16x1xf32>
    %cst_11 = arith.constant -1.000000e+30 : f32
    %10 = vector.shape_cast %9 : vector<2x16x1xi1> to vector<2x16x1xi1>
    %11 = vector.broadcast %10 : vector<2x16x1xi1> to vector<2x16x128xi1>
    %12 = vector.broadcast %cst_11 : f32 to vector<2x16x128xf32>
    %13 = arith.select %11, %6, %12 : vector<2x16x128xi1>, vector<2x16x128xf32>
    %cst_12 = arith.constant dense<0xFF800000> : vector<2x128xf32>
    %14 = vector.multi_reduction <maximumf>, %13, %cst_12 [1] : vector<2x16x128xf32> to vector<2x128xf32>
    %cst_13 = arith.constant dense<0.000000e+00> : vector<2x1xf32>
    %15 = vector.multi_reduction <add>, %2, %cst_13 [1] : vector<2x16x1xf32> to vector<2x1xf32>
    %cst_14 = arith.constant dense<0.000000e+00> : vector<2x128xf32>
    %16 = vector.multi_reduction <add>, %6, %cst_14 [1] : vector<2x16x128xf32> to vector<2x128xf32>
    %17 = tpu.reciprocal %15 {approx = true} : vector<2x1xf32> -> vector<2x1xf32>
    %18 = vector.broadcast %17 : vector<2x1xf32> to vector<2x128xf32>
    %19 = arith.mulf %16, %18 : vector<2x128xf32>
    %c0_15 = arith.constant 0 : index
    %c0_16 = arith.constant 0 : index
    %20 = vector.load %arg4[%c0_15, %c0_16] : memref<2x256xf32, #tpu.memory_space<vmem>>, vector<2x128xf32>
    tpu.vector_store %arg4[%c0_15, %c0_16], %14 {strides = array<i32>} : memref<2x256xf32, #tpu.memory_space<vmem>>, vector<2x128xf32>,
    %c0_17 = arith.constant 0 : index
    %c128 = arith.constant 128 : index
    %21 = vector.load %arg4[%c0_17, %c128] : memref<2x256xf32, #tpu.memory_space<vmem>>, vector<2x128xf32>
    tpu.vector_store %arg4[%c0_17, %c128], %19 {strides = array<i32>} : memref<2x256xf32, #tpu.memory_space<vmem>>, vector<2x128xf32>,
    return
  }
}

module attributes {stable_mosaic.version = 11 : i64} {
  func.func @kernel(%arg0: memref<32x128xf32, #tpu.memory_space<vmem>>, %arg1: memref<32x32xf32, #tpu.memory_space<vmem>>, %arg2: memref<32x1xf32, #tpu.memory_space<vmem>>, %arg3: memref<1x32xf32, #tpu.memory_space<vmem>>, %arg4: memref<256x128xf32, #tpu.memory_space<vmem>>, %arg5: memref<1x128xf32, #tpu.memory_space<vmem>>, %arg6: memref<128x1xf32, #tpu.memory_space<vmem>>, %arg7: memref<32x128xf32, #tpu.memory_space<vmem>>, %arg8: memref<32x1xf32, #tpu.memory_space<vmem>>) attributes {dimension_semantics = [], scalar_prefetch = 0 : i64, scratch_operands = 0 : i64, tpu.core_type = #tpu.core_type<tc>} {
    %c0 = arith.constant 0 : index
    %c0_0 = arith.constant 0 : index
    %0 = vector.load %arg0[%c0, %c0_0] : memref<32x128xf32, #tpu.memory_space<vmem>>, vector<32x128xf32>
    %c0_1 = arith.constant 0 : index
    %c0_2 = arith.constant 0 : index
    %1 = vector.load %arg1[%c0_1, %c0_2] : memref<32x32xf32, #tpu.memory_space<vmem>>, vector<32x32xf32>
    %c0_3 = arith.constant 0 : index
    %c0_4 = arith.constant 0 : index
    %2 = vector.load %arg2[%c0_3, %c0_4] : memref<32x1xf32, #tpu.memory_space<vmem>>, vector<32x1xf32>
    %3 = vector.broadcast %2 : vector<32x1xf32> to vector<32x32xf32>
    %4 = arith.mulf %1, %3 : vector<32x32xf32>
    %c0_5 = arith.constant 0 : index
    %c0_6 = arith.constant 0 : index
    %5 = vector.load %arg3[%c0_5, %c0_6] : memref<1x32xf32, #tpu.memory_space<vmem>>, vector<1x32xf32>
    %6 = vector.broadcast %5 : vector<1x32xf32> to vector<32x32xf32>
    %7 = arith.mulf %4, %6 : vector<32x32xf32>
    %cst = arith.constant dense<0.000000e+00> : vector<32x128xf32>
    %8 = tpu.matmul %7, %0, %cst {dimension_numbers = #tpu.dot_dimension_numbers<[1], [0], [0], [1], [0, 0, 1, 1], [], []>} : vector<32x32xf32>, vector<32x128xf32>, vector<32x128xf32> -> vector<32x128xf32>
    %9 = tpu.concatenate %8, %0 in 1 : vector<32x128xf32>, vector<32x128xf32> -> vector<32x256xf32>
    %c0_7 = arith.constant 0 : index
    %c0_8 = arith.constant 0 : index
    %10 = vector.load %arg4[%c0_7, %c0_8] : memref<256x128xf32, #tpu.memory_space<vmem>>, vector<256x128xf32>
    %cst_9 = arith.constant dense<0.000000e+00> : vector<32x128xf32>
    %11 = tpu.matmul %9, %10, %cst_9 {dimension_numbers = #tpu.dot_dimension_numbers<[1], [0], [0], [1], [0, 0, 1, 1], [], []>} : vector<32x256xf32>, vector<256x128xf32>, vector<32x128xf32> -> vector<32x128xf32>
    %c0_10 = arith.constant 0 : index
    %c0_11 = arith.constant 0 : index
    %12 = vector.load %arg5[%c0_10, %c0_11] : memref<1x128xf32, #tpu.memory_space<vmem>>, vector<1x128xf32>
    %13 = vector.broadcast %12 : vector<1x128xf32> to vector<32x128xf32>
    %14 = arith.addf %11, %13 : vector<32x128xf32>
    %cst_12 = arith.constant 0.000000e+00 : f32
    %15 = vector.broadcast %cst_12 : f32 to vector<32x128xf32>
    %16 = arith.maximumf %14, %15 : vector<32x128xf32>
    %c0_13 = arith.constant 0 : index
    %c0_14 = arith.constant 0 : index
    %17 = vector.load %arg7[%c0_13, %c0_14] : memref<32x128xf32, #tpu.memory_space<vmem>>, vector<32x128xf32>
    tpu.vector_store %arg7[%c0_13, %c0_14], %16 {strides = array<i32>} : memref<32x128xf32, #tpu.memory_space<vmem>>, vector<32x128xf32>,
    %c0_15 = arith.constant 0 : index
    %c0_16 = arith.constant 0 : index
    %18 = vector.load %arg6[%c0_15, %c0_16] : memref<128x1xf32, #tpu.memory_space<vmem>>, vector<128x1xf32>
    %cst_17 = arith.constant dense<0.000000e+00> : vector<32x1xf32>
    %19 = tpu.matmul %16, %18, %cst_17 {dimension_numbers = #tpu.dot_dimension_numbers<[1], [0], [0], [1], [0, 0, 1, 1], [], []>} : vector<32x128xf32>, vector<128x1xf32>, vector<32x1xf32> -> vector<32x1xf32>
    %20 = math.tanh %19 : vector<32x1xf32>
    %c0_18 = arith.constant 0 : index
    %c0_19 = arith.constant 0 : index
    %21 = vector.load %arg8[%c0_18, %c0_19] : memref<32x1xf32, #tpu.memory_space<vmem>>, vector<32x1xf32>
    tpu.vector_store %arg8[%c0_18, %c0_19], %20 {strides = array<i32>} : memref<32x1xf32, #tpu.memory_space<vmem>>, vector<32x1xf32>,
    return
  }
}

module attributes {stable_mosaic.version = 11 : i64} {
  func.func @_gate_readout_kernel(%arg0: memref<2x16x128xf32, #tpu.memory_space<vmem>>, %arg1: memref<2x16x1xf32, #tpu.memory_space<vmem>>, %arg2: memref<2x16x1xf32, #tpu.memory_space<vmem>>, %arg3: memref<2x16x128xf32, #tpu.memory_space<vmem>>, %arg4: memref<2x256xf32, #tpu.memory_space<vmem>>) attributes {dimension_semantics = [], scalar_prefetch = 0 : i64, scratch_operands = 0 : i64, tpu.core_type = #tpu.core_type<tc>} {
    %c0 = arith.constant 0 : index
    %c0_0 = arith.constant 0 : index
    %c0_1 = arith.constant 0 : index
    %0 = vector.load %arg0[%c0, %c0_0, %c0_1] : memref<2x16x128xf32, #tpu.memory_space<vmem>>, vector<2x16x128xf32>
    %c0_2 = arith.constant 0 : index
    %c0_3 = arith.constant 0 : index
    %c0_4 = arith.constant 0 : index
    %1 = vector.load %arg1[%c0_2, %c0_3, %c0_4] : memref<2x16x1xf32, #tpu.memory_space<vmem>>, vector<2x16x1xf32>
    %c0_5 = arith.constant 0 : index
    %c0_6 = arith.constant 0 : index
    %c0_7 = arith.constant 0 : index
    %2 = vector.load %arg2[%c0_5, %c0_6, %c0_7] : memref<2x16x1xf32, #tpu.memory_space<vmem>>, vector<2x16x1xf32>
    %3 = vector.broadcast %1 : vector<2x16x1xf32> to vector<2x16x128xf32>
    %4 = arith.mulf %0, %3 : vector<2x16x128xf32>
    %5 = vector.broadcast %2 : vector<2x16x1xf32> to vector<2x16x128xf32>
    %6 = arith.mulf %4, %5 : vector<2x16x128xf32>
    %c0_8 = arith.constant 0 : index
    %c0_9 = arith.constant 0 : index
    %c0_10 = arith.constant 0 : index
    %7 = vector.load %arg3[%c0_8, %c0_9, %c0_10] : memref<2x16x128xf32, #tpu.memory_space<vmem>>, vector<2x16x128xf32>
    tpu.vector_store %arg3[%c0_8, %c0_9, %c0_10], %6 {strides = array<i32>} : memref<2x16x128xf32, #tpu.memory_space<vmem>>, vector<2x16x128xf32>,
    %cst = arith.constant 0.000000e+00 : f32
    %8 = vector.broadcast %cst : f32 to vector<2x16x1xf32>
    %9 = arith.cmpf ogt, %2, %8 : vector<2x16x1xf32>
    %cst_11 = arith.constant -1.000000e+30 : f32
    %10 = vector.shape_cast %9 : vector<2x16x1xi1> to vector<2x16x1xi1>
    %11 = vector.broadcast %10 : vector<2x16x1xi1> to vector<2x16x128xi1>
    %12 = vector.broadcast %cst_11 : f32 to vector<2x16x128xf32>
    %13 = arith.select %11, %6, %12 : vector<2x16x128xi1>, vector<2x16x128xf32>
    %cst_12 = arith.constant dense<0xFF800000> : vector<2x128xf32>
    %14 = vector.multi_reduction <maximumf>, %13, %cst_12 [1] : vector<2x16x128xf32> to vector<2x128xf32>
    %cst_13 = arith.constant dense<0.000000e+00> : vector<2x1xf32>
    %15 = vector.multi_reduction <add>, %2, %cst_13 [1] : vector<2x16x1xf32> to vector<2x1xf32>
    %cst_14 = arith.constant dense<0.000000e+00> : vector<2x128xf32>
    %16 = vector.multi_reduction <add>, %6, %cst_14 [1] : vector<2x16x128xf32> to vector<2x128xf32>
    %17 = tpu.reciprocal %15 {approx = true} : vector<2x1xf32> -> vector<2x1xf32>
    %18 = vector.broadcast %17 : vector<2x1xf32> to vector<2x128xf32>
    %19 = arith.mulf %16, %18 : vector<2x128xf32>
    %c0_15 = arith.constant 0 : index
    %c0_16 = arith.constant 0 : index
    %20 = vector.load %arg4[%c0_15, %c0_16] : memref<2x256xf32, #tpu.memory_space<vmem>>, vector<2x128xf32>
    tpu.vector_store %arg4[%c0_15, %c0_16], %14 {strides = array<i32>} : memref<2x256xf32, #tpu.memory_space<vmem>>, vector<2x128xf32>,
    %c0_17 = arith.constant 0 : index
    %c128 = arith.constant 128 : index
    %21 = vector.load %arg4[%c0_17, %c128] : memref<2x256xf32, #tpu.memory_space<vmem>>, vector<2x128xf32>
    tpu.vector_store %arg4[%c0_17, %c128], %19 {strides = array<i32>} : memref<2x256xf32, #tpu.memory_space<vmem>>, vector<2x128xf32>,
    return
  }
}

module attributes {stable_mosaic.version = 11 : i64} {
  func.func @kernel(%arg0: memref<2x256xf32, #tpu.memory_space<vmem>>, %arg1: memref<256x32xf32, #tpu.memory_space<vmem>>, %arg2: memref<1x32xf32, #tpu.memory_space<vmem>>, %arg3: memref<32x32xf32, #tpu.memory_space<vmem>>, %arg4: memref<1x32xf32, #tpu.memory_space<vmem>>, %arg5: memref<32x4xf32, #tpu.memory_space<vmem>>, %arg6: memref<1x4xf32, #tpu.memory_space<vmem>>, %arg7: memref<2x4xf32, #tpu.memory_space<vmem>>) attributes {dimension_semantics = [], scalar_prefetch = 0 : i64, scratch_operands = 0 : i64, tpu.core_type = #tpu.core_type<tc>} {
    %c0 = arith.constant 0 : index
    %c0_0 = arith.constant 0 : index
    %0 = vector.load %arg0[%c0, %c0_0] : memref<2x256xf32, #tpu.memory_space<vmem>>, vector<2x256xf32>
    %c0_1 = arith.constant 0 : index
    %c0_2 = arith.constant 0 : index
    %1 = vector.load %arg1[%c0_1, %c0_2] : memref<256x32xf32, #tpu.memory_space<vmem>>, vector<256x32xf32>
    %cst = arith.constant dense<0.000000e+00> : vector<2x32xf32>
    %2 = tpu.matmul %0, %1, %cst {dimension_numbers = #tpu.dot_dimension_numbers<[1], [0], [0], [1], [0, 0, 1, 1], [], []>} : vector<2x256xf32>, vector<256x32xf32>, vector<2x32xf32> -> vector<2x32xf32>
    %c0_3 = arith.constant 0 : index
    %c0_4 = arith.constant 0 : index
    %3 = vector.load %arg2[%c0_3, %c0_4] : memref<1x32xf32, #tpu.memory_space<vmem>>, vector<1x32xf32>
    %4 = vector.broadcast %3 : vector<1x32xf32> to vector<2x32xf32>
    %5 = arith.addf %2, %4 : vector<2x32xf32>
    %cst_5 = arith.constant 0.000000e+00 : f32
    %6 = vector.broadcast %cst_5 : f32 to vector<2x32xf32>
    %7 = arith.subf %6, %5 : vector<2x32xf32>
    %8 = math.exp %7 : vector<2x32xf32>
    %cst_6 = arith.constant 1.000000e+00 : f32
    %9 = vector.broadcast %cst_6 : f32 to vector<2x32xf32>
    %10 = arith.addf %9, %8 : vector<2x32xf32>
    %11 = tpu.reciprocal %10 {approx = true} : vector<2x32xf32> -> vector<2x32xf32>
    %12 = arith.mulf %5, %11 : vector<2x32xf32>
    %c0_7 = arith.constant 0 : index
    %c0_8 = arith.constant 0 : index
    %13 = vector.load %arg3[%c0_7, %c0_8] : memref<32x32xf32, #tpu.memory_space<vmem>>, vector<32x32xf32>
    %cst_9 = arith.constant dense<0.000000e+00> : vector<2x32xf32>
    %14 = tpu.matmul %12, %13, %cst_9 {dimension_numbers = #tpu.dot_dimension_numbers<[1], [0], [0], [1], [0, 0, 1, 1], [], []>} : vector<2x32xf32>, vector<32x32xf32>, vector<2x32xf32> -> vector<2x32xf32>
    %c0_10 = arith.constant 0 : index
    %c0_11 = arith.constant 0 : index
    %15 = vector.load %arg4[%c0_10, %c0_11] : memref<1x32xf32, #tpu.memory_space<vmem>>, vector<1x32xf32>
    %16 = vector.broadcast %15 : vector<1x32xf32> to vector<2x32xf32>
    %17 = arith.addf %14, %16 : vector<2x32xf32>
    %cst_12 = arith.constant 0.000000e+00 : f32
    %18 = vector.broadcast %cst_12 : f32 to vector<2x32xf32>
    %19 = arith.subf %18, %17 : vector<2x32xf32>
    %20 = math.exp %19 : vector<2x32xf32>
    %cst_13 = arith.constant 1.000000e+00 : f32
    %21 = vector.broadcast %cst_13 : f32 to vector<2x32xf32>
    %22 = arith.addf %21, %20 : vector<2x32xf32>
    %23 = tpu.reciprocal %22 {approx = true} : vector<2x32xf32> -> vector<2x32xf32>
    %24 = arith.mulf %17, %23 : vector<2x32xf32>
    %c0_14 = arith.constant 0 : index
    %c0_15 = arith.constant 0 : index
    %25 = vector.load %arg5[%c0_14, %c0_15] : memref<32x4xf32, #tpu.memory_space<vmem>>, vector<32x4xf32>
    %cst_16 = arith.constant dense<0.000000e+00> : vector<2x4xf32>
    %26 = tpu.matmul %24, %25, %cst_16 {dimension_numbers = #tpu.dot_dimension_numbers<[1], [0], [0], [1], [0, 0, 1, 1], [], []>} : vector<2x32xf32>, vector<32x4xf32>, vector<2x4xf32> -> vector<2x4xf32>
    %c0_17 = arith.constant 0 : index
    %c0_18 = arith.constant 0 : index
    %27 = vector.load %arg6[%c0_17, %c0_18] : memref<1x4xf32, #tpu.memory_space<vmem>>, vector<1x4xf32>
    %28 = vector.broadcast %27 : vector<1x4xf32> to vector<2x4xf32>
    %29 = arith.addf %26, %28 : vector<2x4xf32>
    %cst_19 = arith.constant dense<0xFF800000> : vector<2xf32>
    %30 = vector.multi_reduction <maximumf>, %29, %cst_19 [1] : vector<2x4xf32> to vector<2xf32>
    %31 = vector.shape_cast %30 : vector<2xf32> to vector<2x1xf32>
    %32 = vector.broadcast %31 : vector<2x1xf32> to vector<2x4xf32>
    %33 = arith.subf %29, %32 : vector<2x4xf32>
    %34 = math.exp %33 : vector<2x4xf32>
    %cst_20 = arith.constant dense<0.000000e+00> : vector<2xf32>
    %35 = vector.multi_reduction <add>, %34, %cst_20 [1] : vector<2x4xf32> to vector<2xf32>
    %36 = vector.shape_cast %35 : vector<2xf32> to vector<2x1xf32>
    %37 = math.log %36 : vector<2x1xf32>
    %38 = vector.broadcast %37 : vector<2x1xf32> to vector<2x4xf32>
    %39 = arith.subf %33, %38 : vector<2x4xf32>
    %c0_21 = arith.constant 0 : index
    %c0_22 = arith.constant 0 : index
    %40 = vector.load %arg7[%c0_21, %c0_22] : memref<2x4xf32, #tpu.memory_space<vmem>>, vector<2x4xf32>
    tpu.vector_store %arg7[%c0_21, %c0_22], %39 {strides = array<i32>} : memref<2x4xf32, #tpu.memory_space<vmem>>, vector<2x4xf32>,
    return
  }
}

</mosaic_0001>

<bundles_post_ra>
// kernel: forward.7
= control target key start
LH: loop header
LB: loop body
LE: loop exit
PB: predicated region body
PF: predicated region fallthrough
CT: control target
= control target key end

     0   :  { %v698_v0 = vmov 0   ;;  %vm75_vm0 = vcmask 261120   ;;  %vm177_vm1 = vcmask 130048   ;;  %vm496_vm2 = vcmask 7168   ;;  %s882_s2 = inlined_call_operand.vmem [shape: f32[32,1], index: 2, kind: input, shape index: {}]   ;;  %s883_s0 = inlined_call_operand.vmem [shape: f32[32,16], index: 0, kind: input, shape index: {}]   ;;  %s884_s4 = inlined_call_operand.vmem [shape: f32[32,128], index: 4, kind: input, shape index: {}]   ;;  %s885_s1 = inlined_call_operand.vmem [shape: f32[32,32], index: 1, kind: input, shape index: {}]   ;;  %s886_s3 = inlined_call_operand.vmem [shape: f32[1,32], index: 3, kind: input, shape index: {}]   ;;  %s887_s6 = inlined_call_operand.vmem [shape: f32[128,1], index: 6, kind: input, shape index: {}]   ;;  %s888_s5 = inlined_call_operand.vmem [shape: f32[1,128], index: 5, kind: input, shape index: {}]   ;;  %s889_s7 = inlined_call_operand.vmem [shape: f32[32,128], index: 7, kind: output, shape index: {0}]   ;;  %s890_s8 = inlined_call_operand.vmem [shape: f32[32,1], index: 8, kind: output, shape index: {1}]  }
   0x1   :  { %689 = vset.pattern.permute.xlu1 %v698_v0  ;;  %688 = vset.pattern.permute.xlu0 %v698_v0  ;;  %v38_v1 = vld [vmem:[%s882_s2 + $0x10] sm:$0xff]  ;;  %v36_v2 = vld [vmem:[%s882_s2] sm:$0xff]  ;;  %v39_v3 = vld [vmem:[%s882_s2 + $0x18] sm:$0xff] }
   0x2   :  { %52 = vperm.xlu1 %689, %v38_v1   ;;  %42 = vperm.xlu0 %688, %v36_v2   ;;  %v37_v4 = vld [vmem:[%s882_s2 + $0x8] sm:$0xff]  ;;  %v28_v5 = vld [vmem:[%s883_s0] sm:$0xff]  ;;  %v30_v8 = vld [vmem:[%s883_s0 + $0x10] sm:$0xff] }
   0x3   :  { %v29_v6 = vld [vmem:[%s883_s0 + $0x8] sm:$0xff]  ;;  %v31_v9 = vld [vmem:[%s883_s0 + $0x18] sm:$0xff]  ;;  %v175_v11 = vld [vmem:[%s884_s4 + $0x10] sm:$0xff] }
   0x4   :  { %v635_v7 = vpack.c.bf16 %v29_v6, %v28_v5  ;;  %v639_v10 = vpack.c.bf16 %v31_v9, %v30_v8  ;;  %v176_v12 = vld [vmem:[%s884_s4 + $0x18] sm:$0xff]  ;;  %v32_v14 = vld [vmem:[%s885_s1] sm:$0xff]  ;;  %v34_v15 = vld [vmem:[%s885_s1 + $0x10] sm:$0xff] }
   0x5   :  { %v643_v13 = vpack.c.bf16 %v176_v12, %v175_v11  ;;  %v509_v16 = vld [vmem:[%s886_s3] ss:$0 sm:$0xff]  ;;  %v33_v21 = vld [vmem:[%s885_s1 + $0x8] sm:$0xff]  ;;  %v35_v24 = vld [vmem:[%s885_s1 + $0x18] sm:$0xff] }
   0x6   :  { %57 = vperm.xlu1 %689, %v39_v3   ;;  %47 = vperm.xlu0 %688, %v37_v4   ;;  %v173_v26 = vld [vmem:[%s884_s4] sm:$0xff]  ;;  %v174_v27 = vld [vmem:[%s884_s4 + $0x8] sm:$0xff]  ;;  %v393_v36 = vld [vmem:[%s887_s6 + $0x10] sm:$0xff] }
   0x7   :  { %636 = vmatprep.subr.bf16.mxu1 %v635_v7  ;;  %v647_v32 = vpack.c.bf16 %v174_v27, %v173_v26  ;;  %v391_v34 = vld [vmem:[%s887_s6] sm:$0xff]  ;;  %v392_v35 = vld [vmem:[%s887_s6 + $0x8] sm:$0xff]  ;;  %v394_v38 = vld [vmem:[%s887_s6 + $0x18] sm:$0xff] }
   0x8   :  { %638 = vmatpush3.bf16.msra.mxu1 %v635_v7  ;;  %v651_v37 = vpack.c.bf16 %v392_v35, %v391_v34  ;;  %v655_v39 = vpack.c.bf16 %v394_v38, %v393_v36  ;;  %v395_v40 = vld [vmem:[%s887_s6 + $0x20] sm:$0xff]  ;;  %v396_v41 = vld [vmem:[%s887_s6 + $0x28] sm:$0xff]  ;;  %v397_v43 = vld [vmem:[%s887_s6 + $0x30] sm:$0xff] }
   0x9   :  { %640 = vmatprep.subr.bf16.mxu1 %v639_v10  ;;  %v659_v42 = vpack.c.bf16 %v396_v41, %v395_v40  ;;  %v398_v44 = vld [vmem:[%s887_s6 + $0x38] sm:$0xff]  ;;  %v399_v46 = vld [vmem:[%s887_s6 + $0x40] sm:$0xff]  ;;  %v400_v47 = vld [vmem:[%s887_s6 + $0x48] sm:$0xff] }
   0xa   :  { %652 = vmatprep.subr.bf16.mxu0 %v651_v37  ;;  %v663_v45 = vpack.c.bf16 %v398_v44, %v397_v43  ;;  %v667_v48 = vpack.c.bf16 %v400_v47, %v399_v46  ;;  %v401_v49 = vld [vmem:[%s887_s6 + $0x50] sm:$0xff]  ;;  %v402_v50 = vld [vmem:[%s887_s6 + $0x58] sm:$0xff]  ;;  %v403_v52 = vld [vmem:[%s887_s6 + $0x60] sm:$0xff] }
   0xb   :  { %654 = vmatpush3.bf16.msra.mxu0 %v651_v37  ;;  %v671_v51 = vpack.c.bf16 %v402_v50, %v401_v49  ;;  %v404_v53 = vld [vmem:[%s887_s6 + $0x68] sm:$0xff]  ;;  %v405_v59 = vld [vmem:[%s887_s6 + $0x70] sm:$0xff]  ;;  %v406_v60 = vld [vmem:[%s887_s6 + $0x78] sm:$0xff] }
   0xc   :  { %642 = vmatpush3.bf16.msra.mxu1 %v639_v10  ;;  %656 = vmatprep.subr.bf16.mxu0 %v655_v39  ;;  %v675_v54 = vpack.c.bf16 %v404_v53, %v403_v52  ;;  %v679_v61 = vpack.c.bf16 %v406_v60, %v405_v59  ;;  %v522_v62 = vld [vmem:[%s888_s5] ss:$0 sm:$0xff] }
   0xd   :  { %644 = vmatprep.subr.bf16.mxu1 %v643_v13 }
   0xf   :  { %658 = vmatpush3.bf16.msra.mxu0 %v655_v39 }
  0x10   :  { %660 = vmatprep.subr.bf16.mxu0 %v659_v42 }
  0x13   :  { %662 = vmatpush3.bf16.msra.mxu0 %v659_v42 }
  0x14   :  { %664 = vmatprep.subr.bf16.mxu0 %v663_v45 }
  0x17   :  { %666 = vmatpush3.bf16.msra.mxu0 %v663_v45 }
  0x18   :  { %668 = vmatprep.subr.bf16.mxu0 %v667_v48 }
  0x1b   :  { %670 = vmatpush3.bf16.msra.mxu0 %v667_v48 }
  0x1c   :  { %672 = vmatprep.subr.bf16.mxu0 %v671_v51 }
  0x1f   :  { %674 = vmatpush3.bf16.msra.mxu0 %v671_v51 }
  0x20   :  { %676 = vmatprep.subr.bf16.mxu0 %v675_v54 }
  0x23   :  { %678 = vmatpush3.bf16.msra.mxu0 %v675_v54 }
  0x24   :  { %680 = vmatprep.subr.bf16.mxu0 %v679_v61 }
  0x27   :  { %682 = vmatpush3.bf16.msra.mxu0 %v679_v61 }
  0x81   :  { %v53_v17 = vpop.permute.xlu1 %52  ;;  %v43_v18 = vpop.permute.xlu0 %42 }
  0x82   :  { %v60_v19 = vmul.f32 %v43_v18, %v32_v14  ;;  %v62_v20 = vmul.f32 %v53_v17, %v34_v15 }
  0x84   :  { %v71_v22 = vmul.f32 %v509_v16, %v60_v19  ;;  %v73_v29 = vmul.f32 %v509_v16, %v62_v20 }
  0x85   :  { %v58_v23 = vpop.permute.xlu1 %57  ;;  %v48_v25 = vpop.permute.xlu0 %47 }
  0x86   :  { %v61_v28 = vmul.f32 %v48_v25, %v33_v21  ;;  %571 = vmatprep.mubr.msk.f32.mxu1 %vm75_vm0, %v71_v22  ;;  %v63_v30 = vmul.f32 %v58_v23, %v35_v24 }
  0x88   :  { %v72_v31 = vmul.f32 %v509_v16, %v61_v28  ;;  %v74_v33 = vmul.f32 %v509_v16, %v63_v30 }
  0x8a   :  { %572 = vmatmul.mubr.msk.f32.vlgmr.msra.gmra.mrb[0].mxu1 %vm75_vm0, %v72_v31 }
  0x8b   :  { %574 = vmatprep.mubr.msk.f32.mxu1 %vm75_vm0, %v73_v29  ;;  %646 = vmatpush3.bf16.msra.mxu1 %v643_v13 }
  0x8c   :  { %648 = vmatprep.subr.bf16.mxu1 %v647_v32 }
  0x8e   :  { %575 = vmatmul.mubr.msk.f32.gmra.mrb[2].mxu1 %vm75_vm0, %v74_v33 }
  0x8f   :  { %581 = vmatprep.mubr.msk.f32.mxu1 %vm177_vm1, %v28_v5 }
  0x92   :  { %582 = vmatmul.mubr.msk.f32.vlgmr.msra.gmra.mrb[4].mxu1 %vm177_vm1, %v29_v6 }
  0x93   :  { %650 = vmatpush3.bf16.msra.mxu1 %v647_v32  ;;  %584 = vmatprep.mubr.msk.f32.mxu1 %vm177_vm1, %v30_v8 }
  0x96   :  { %585 = vmatmul.mubr.msk.f32.gmra.mrb[6].mxu1 %vm177_vm1, %v31_v9 }
 0x15d   :  { %v573_v55 = vpop.f32.mrb[0].mxu1 }
 0x15e   :  { %v154_v56 = vpop.f32.mrb[1].mxu1 }
 0x15f   :  { %591 = vmatprep.mubr.msk.f32.mxu1 %vm177_vm1, %v154_v56 }
 0x160   :  { %592 = vmatmul.mubr.msk.f32.vlgmr.msra.gmra.mrb[4].mxu1 %vm177_vm1, %v573_v55 }
 0x161   :  { %v576_v57 = vpop.f32.mrb[2].mxu1 }
 0x162   :  { %v164_v58 = vpop.f32.mrb[3].mxu1 }
 0x163   :  { %594 = vmatprep.mubr.msk.f32.mxu1 %vm177_vm1, %v164_v58 }
 0x164   :  { %595 = vmatmul.mubr.msk.f32.gmra.mrb[6].mxu1 %vm177_vm1, %v576_v57 }
 0x233   :  { %v593_v63 = vpop.f32.mrb[4].mxu1 }
 0x234   :  { %v380_v0 = vadd.f32 %v593_v63, %v522_v62  ;;  %v353_v1 = vpop.f32.mrb[5].mxu1 }
 0x235   :  { %v379_v2 = vadd.f32 %v522_v62, %v353_v1 }
 0x236   :  { %v384_v3 = vmax.f32 %v380_v0, 0.0 }
 0x237   :  { %v383_v4 = vmax.f32 %v379_v2, 0.0  ;;  %v596_v5 = vpop.f32.mrb[6].mxu1 }
 0x238   :  { %388 = vst [vmem:[%s889_s7 + $0x8] sm:$0xff] %v384_v3  ;;  %v382_v6 = vadd.f32 %v596_v5, %v522_v62  ;;  %v363_v7 = vpop.f32.mrb[7].mxu1 }
 0x239   :  { %387 = vst [vmem:[%s889_s7] sm:$0xff] %v383_v4  ;;  %v381_v8 = vadd.f32 %v522_v62, %v363_v7  ;;  %629 = vmatprep.mubr.f32.mxu0 %v383_v4 }
 0x23a   :  { %v386_v9 = vmax.f32 %v382_v6, 0.0  ;;  %630 = vmatmul.mubr.f32.vlgmr.msra.gmra.mrb[0].mxu0 %v384_v3 }
 0x23b   :  { %v385_v10 = vmax.f32 %v381_v8, 0.0 }
 0x23c   :  { %390 = vst [vmem:[%s889_s7 + $0x18] sm:$0xff] %v386_v9 }
 0x23d   :  { %389 = vst [vmem:[%s889_s7 + $0x10] sm:$0xff] %v385_v10  ;;  %632 = vmatprep.mubr.f32.mxu0 %v385_v10 }
 0x23e   :  { %633 = vmatmul.mubr.f32.gmra.mrb[2].mxu0 %v386_v9 }
 0x30d   :  { %v631_v11 = vpop.f32.mrb[0].mxu0 }
 0x30e   :  { %690 = vtanh.f32 %v631_v11  ;;  %v473_v12 = vpop.f32.mrb[1].mxu0 }
 0x30f   :  { %692 = vtanh.f32 %v473_v12 }
 0x311   :  { %v634_v13 = vpop.f32.mrb[2].mxu0 }
 0x312   :  { %694 = vtanh.f32 %v634_v13  ;;  %v483_v14 = vpop.f32.mrb[3].mxu0 }
 0x313   :  { %696 = vtanh.f32 %v483_v14 }
 0x318   :  { %v691_v15 = vpop.eup %690 }
 0x319   :  { %v693_v16 = vpop.eup %692  ;;  %498 = vst.msk [vmem:[%s890_s8 + $0x8] sm:$0xff] %vm496_vm2, %v691_v15 }
 0x31a   :  { %497 = vst.msk [vmem:[%s890_s8] sm:$0xff] %vm496_vm2, %v693_v16 }
 0x31c   :  { %v695_v17 = vpop.eup %694 }
 0x31d   :  { %v697_v18 = vpop.eup %696  ;;  %500 = vst.msk [vmem:[%s890_s8 + $0x18] sm:$0xff] %vm496_vm2, %v695_v17 }
 0x31e   :  { %499 = vst.msk [vmem:[%s890_s8 + $0x10] sm:$0xff] %vm496_vm2, %v697_v18 }

// kernel: forward.8
= control target key start
LH: loop header
LB: loop body
LE: loop exit
PB: predicated region body
PF: predicated region fallthrough
CT: control target
= control target key end

     0   :  { %vm122_vm0 = vcmask 7168   ;;  %v241_v0 = vmov 0   ;;  %v242_v58 = vmov 1983009808   ;;  %v174_v60 = vlaneseq  ;;  %s330_s1 = inlined_call_operand.vmem [shape: f32[2,16,1], index: 1, kind: input, shape index: {}]   ;;  %s331_s2 = inlined_call_operand.vmem [shape: f32[2,16,1], index: 2, kind: input, shape index: {}]   ;;  %s332_s0 = inlined_call_operand.vmem [shape: f32[2,16,128], index: 0, kind: input, shape index: {}]   ;;  %s333_s3 = inlined_call_operand.vmem [shape: f32[2,16,128], index: 3, kind: output, shape index: {0}]   ;;  %s334_s4 = inlined_call_operand.vmem [shape: f32[2,256], index: 4, kind: output, shape index: {1}]  }
   0x1   :  { %236 = vset.pattern.permute.xlu1 %v241_v0  ;;  %235 = vset.pattern.permute.xlu0 %v241_v0  ;;  %v22_v1 = vld [vmem:[%s330_s1 + $0x10] sm:$0xff]  ;;  %v20_v2 = vld [vmem:[%s330_s1] sm:$0xff]  ;;  %v23_v3 = vld [vmem:[%s330_s1 + $0x18] sm:$0xff]  ;;  %v172_v59 = vunpack.c.l.s4 %v242_v58  ;;  %vm190_vm9 = vcmask 1041409   ;;  %vm192_vm10 = vcmask 1043459   ;;  %vm194_vm11 = vcmask 1045509  }
   0x2   :  { %40 = vperm.xlu0 %235, %v22_v1   ;;  %30 = vperm.xlu1 %236, %v20_v2   ;;  %v26_v4 = vld [vmem:[%s331_s2 + $0x10] sm:$0xff]  ;;  %v27_v5 = vld [vmem:[%s331_s2 + $0x18] sm:$0xff]  ;;  %v21_v6 = vld [vmem:[%s330_s1 + $0x8] sm:$0xff]  ;;  %vm196_vm12 = vcmask 1047559  }
   0x3   :  { %v132_v7 = vsel %vm122_vm0, %v26_v4, 0.0  ;;  %v133_v8 = vsel %vm122_vm0, %v27_v5, 0.0  ;;  %v24_v9 = vld [vmem:[%s331_s2] sm:$0xff]  ;;  %v25_v10 = vld [vmem:[%s331_s2 + $0x8] sm:$0xff]  ;;  %vm82_vm1 = vcmp.gt.f32.partialorder %v26_v4, 0.0  ;;  %vm83_vm2 = vcmp.gt.f32.partialorder %v27_v5, 0.0 }
   0x4   :  { %v134_v11 = vadd.f32 %v133_v8, %v132_v7  ;;  %v123_v12 = vsel %vm122_vm0, %v24_v9, 0.0  ;;  %v124_v13 = vsel %vm122_vm0, %v25_v10, 0.0  ;;  %v86_v25 = vsel %vm82_vm1, 1, %v241_v0  ;;  %v18_v35 = vld [vmem:[%s332_s0 + $0x10] sm:$0xff]  ;;  %v19_v37 = vld [vmem:[%s332_s0 + $0x18] sm:$0xff]  ;;  %v16_v41 = vld [vmem:[%s332_s0] sm:$0xff] }
   0x5   :  { %v125_v14 = vadd.f32 %v124_v13, %v123_v12  ;;  %v87_v26 = vsel %vm83_vm2, 1, %v241_v0  ;;  %vm80_vm3 = vcmp.gt.f32.partialorder %v24_v9, 0.0  ;;  %vm81_vm4 = vcmp.gt.f32.partialorder %v25_v10, 0.0  ;;  %v17_v42 = vld [vmem:[%s332_s0 + $0x8] sm:$0xff] }
   0x6   :  { %45 = vperm.xlu0 %235, %v23_v3   ;;  %35 = vperm.xlu1 %236, %v21_v6   ;;  %v135_v15 = vrot.slane %v134_v11, 4  ;;  %v84_v29 = vsel %vm80_vm3, 1, %v241_v0  ;;  %v85_v30 = vsel %vm81_vm4, 1, %v241_v0  ;;  %v173_v8 = vunpack.c.0.s8 %v172_v59 }
   0x7   :  { %v126_v16 = vrot.slane %v125_v14, 4 }
   0x8   :  { %v136_v17 = vadd.f32 %v135_v15, %v134_v11 }
   0x9   :  { %v127_v18 = vadd.f32 %v126_v16, %v125_v14 }
   0xa   :  { %64 = vperm.xlu0 %235, %v26_v4   ;;  %v137_v19 = vrot.slane %v136_v17, 2  ;;  %69 = vperm.xlu1 %236, %v27_v5   ;;  %v175_v5 = vshrl.u32 %v174_v60, 7 }
   0xb   :  { %v128_v20 = vrot.slane %v127_v18, 2 }
   0xc   :  { %v138_v21 = vadd.f32 %v137_v19, %v136_v17  ;;  %v176_v19 = vsub.s32 %v173_v8, %v175_v5 }
   0xd   :  { %v129_v22 = vadd.f32 %v128_v20, %v127_v18 }
   0xe   :  { %v139_v23 = vrot.slane %v138_v21, 1  ;;  %54 = vperm.xlu0 %235, %v24_v9   ;;  %59 = vperm.xlu1 %236, %v25_v10  }
   0xf   :  { %v130_v24 = vrot.slane %v129_v22, 1 }
  0x10   :  { %v140_v27 = vadd.f32 %v139_v23, %v138_v21 }
  0x11   :  { %v131_v28 = vadd.f32 %v130_v24, %v129_v22 }
  0x12   :  { %237 = vrcp.f32 %v140_v27  ;;  %95 = vperm.xlu0 %235, %v86_v25   ;;  %98 = vperm.xlu1 %236, %v87_v26  }
  0x13   :  { %239 = vrcp.f32 %v131_v28 }
  0x16   :  { %89 = vperm.xlu0 %235, %v84_v29   ;;  %92 = vperm.xlu1 %236, %v85_v30  }
  0x1c   :  { %v238_v31 = vpop.eup %237 }
  0x1d   :  { %v240_v32 = vpop.eup %239  ;;  %164 = vperm.xlu0 %235, %v238_v31  }
  0x1e   :  { %159 = vperm.xlu1 %236, %v240_v32  }
  0x81   :  { %v41_v33 = vpop.permute.xlu0 %40  ;;  %v31_v34 = vpop.permute.xlu1 %30 }
  0x82   :  { %v50_v39 = vmul.f32 %v41_v33, %v18_v35  ;;  %v48_v47 = vmul.f32 %v31_v34, %v16_v41 }
  0x85   :  { %v46_v36 = vpop.permute.xlu0 %45  ;;  %v36_v38 = vpop.permute.xlu1 %35 }
  0x86   :  { %v51_v40 = vmul.f32 %v46_v36, %v19_v37  ;;  %v49_v48 = vmul.f32 %v36_v38, %v17_v42 }
  0x89   :  { %v65_v43 = vpop.permute.xlu0 %64  ;;  %v70_v44 = vpop.permute.xlu1 %69 }
  0x8a   :  { %v74_v45 = vmul.f32 %v65_v43, %v50_v39  ;;  %v75_v46 = vmul.f32 %v70_v44, %v51_v40 }
  0x8c   :  { %78 = vst [vmem:[%s333_s3 + $0x10] sm:$0xff] %v74_v45  ;;  %79 = vst [vmem:[%s333_s3 + $0x18] sm:$0xff] %v75_v46  ;;  %v148_v49 = vadd.f32 %v75_v46, %v74_v45 }
  0x8d   :  { %v55_v50 = vpop.permute.xlu0 %54  ;;  %v60_v51 = vpop.permute.xlu1 %59 }
  0x8e   :  { %v149_v52 = vrot.slane %v148_v49, 4  ;;  %v72_v53 = vmul.f32 %v55_v50, %v48_v47  ;;  %v73_v54 = vmul.f32 %v60_v51, %v49_v48 }
  0x90   :  { %76 = vst [vmem:[%s333_s3] sm:$0xff] %v72_v53  ;;  %77 = vst [vmem:[%s333_s3 + $0x8] sm:$0xff] %v73_v54  ;;  %v141_v55 = vadd.f32 %v73_v54, %v72_v53  ;;  %v150_v56 = vadd.f32 %v149_v52, %v148_v49 }
  0x91   :  { %v96_v57 = vpop.permute.xlu0 %95  ;;  %v99_v61 = vpop.permute.xlu1 %98 }
  0x92   :  { %v142_v62 = vrot.slane %v141_v55, 4  ;;  %vm102_vm5 = vcmp.eq.s32.totalorder %v96_v57, 1  ;;  %vm103_vm6 = vcmp.eq.s32.totalorder %v99_v61, 1  ;;  %v151_v63 = vrot.slane %v150_v56, 2 }
  0x93   :  { %v106_v0 = vsel %vm102_vm5, %v74_v45, -1e+30  ;;  %v107_v1 = vsel %vm103_vm6, %v75_v46, -1e+30 }
  0x94   :  { %v115_v2 = vmax.f32 %v106_v0, %v107_v1  ;;  %v152_v3 = vadd.f32 %v151_v63, %v150_v56  ;;  %v143_v4 = vadd.f32 %v142_v62, %v141_v55 }
  0x95   :  { %v90_v6 = vpop.permute.xlu0 %89  ;;  %v93_v7 = vpop.permute.xlu1 %92 }
  0x96   :  { %v116_v9 = vrot.slane %v115_v2, 4  ;;  %vm100_vm7 = vcmp.eq.s32.totalorder %v90_v6, 1  ;;  %vm101_vm8 = vcmp.eq.s32.totalorder %v93_v7, 1  ;;  %v153_v12 = vrot.slane %v152_v3, 1 }
  0x97   :  { %v104_v10 = vsel %vm100_vm7, %v72_v53, -1e+30  ;;  %v105_v11 = vsel %vm101_vm8, %v73_v54, -1e+30  ;;  %v144_v13 = vrot.slane %v143_v4, 2 }
  0x98   :  { %v117_v14 = vmax.f32 %v115_v2, %v116_v9  ;;  %v108_v15 = vmax.f32 %v104_v10, %v105_v11  ;;  %v154_v20 = vadd.f32 %v153_v12, %v152_v3 }
  0x99   :  { %v145_v16 = vadd.f32 %v144_v13, %v143_v4 }
  0x9a   :  { %v118_v17 = vrot.slane %v117_v14, 2  ;;  %v109_v18 = vrot.slane %v108_v15, 4 }
  0x9b   :  { %v146_v21 = vrot.slane %v145_v16, 1 }
  0x9c   :  { %v119_v22 = vmax.f32 %v117_v14, %v118_v17  ;;  %v110_v23 = vmax.f32 %v108_v15, %v109_v18  ;;  %v165_v24 = vpop.permute.xlu0 %164 }
  0x9d   :  { %v168_v25 = vmul.f32 %v165_v24, %v154_v20  ;;  %v147_v26 = vadd.f32 %v146_v21, %v145_v16  ;;  %v160_v29 = vpop.permute.xlu1 %159 }
  0x9e   :  { %v120_v27 = vrot.slane %v119_v22, 1  ;;  %v111_v28 = vrot.slane %v110_v23, 2 }
  0x9f   :  { %v215_v30 = vrot.slane %v168_v25, %v176_v19  ;;  %v167_v31 = vmul.f32 %v160_v29, %v147_v26 }
  0xa0   :  { %v121_v32 = vmax.f32 %v119_v22, %v120_v27  ;;  %v112_v33 = vmax.f32 %v110_v23, %v111_v28 }
  0xa1   :  { %v218_v34 = vrot.slane %v215_v30, 7  ;;  %v208_v35 = vrot.slane %v167_v31, %v176_v19 }
  0xa2   :  { %v184_v36 = vrot.slane %v121_v32, %v176_v19  ;;  %v113_v37 = vrot.slane %v112_v33, 1 }
  0xa3   :  { %v219_v38 = vsel %vm190_vm9, %v218_v34, %v208_v35 }
  0xa4   :  { %v114_v39 = vmax.f32 %v112_v33, %v113_v37  ;;  %v220_v40 = vsel %vm192_vm10, %v218_v34, %v219_v38  ;;  %v189_v42 = vrot.slane %v184_v36, 7 }
  0xa5   :  { %v221_v41 = vsel %vm194_vm11, %v218_v34, %v220_v40 }
  0xa6   :  { %v177_v43 = vrot.slane %v114_v39, %v176_v19  ;;  %v222_v44 = vsel %vm196_vm12, %v218_v34, %v221_v41 }
  0xa7   :  { %224 = vst [vmem:[%s334_s4 + $0x2] sm:$0x3] %v222_v44 }
  0xa8   :  { %v191_v45 = vsel %vm190_vm9, %v189_v42, %v177_v43 }
  0xa9   :  { %v193_v46 = vsel %vm192_vm10, %v189_v42, %v191_v45 }
  0xaa   :  { %v195_v47 = vsel %vm194_vm11, %v189_v42, %v193_v46 }
  0xab   :  { %v197_v48 = vsel %vm196_vm12, %v189_v42, %v195_v47 }
  0xac   :  { %199 = vst [vmem:[%s334_s4] sm:$0x3] %v197_v48 }

// kernel: forward.9
= control target key start
LH: loop header
LB: loop body
LE: loop exit
PB: predicated region body
PF: predicated region fallthrough
CT: control target
= control target key end

     0   :  { %v636_v0 = vmov 0   ;;  %vm75_vm0 = vcmask 261120   ;;  %vm410_vm1 = vcmask 7168   ;;  %s904_s2 = inlined_call_operand.vmem [shape: f32[32,1], index: 2, kind: input, shape index: {}]   ;;  %s905_s0 = inlined_call_operand.vmem [shape: f32[32,128], index: 0, kind: input, shape index: {}]   ;;  %s906_s4 = inlined_call_operand.vmem [shape: f32[256,128], index: 4, kind: input, shape index: {}]   ;;  %s907_s1 = inlined_call_operand.vmem [shape: f32[32,32], index: 1, kind: input, shape index: {}]   ;;  %s908_s3 = inlined_call_operand.vmem [shape: f32[1,32], index: 3, kind: input, shape index: {}]   ;;  %s909_s6 = inlined_call_operand.vmem [shape: f32[128,1], index: 6, kind: input, shape index: {}]   ;;  %s910_s5 = inlined_call_operand.vmem [shape: f32[1,128], index: 5, kind: input, shape index: {}]   ;;  %s911_s7 = inlined_call_operand.vmem [shape: f32[32,128], index: 7, kind: output, shape index: {0}]   ;;  %s912_s8 = inlined_call_operand.vmem [shape: f32[32,1], index: 8, kind: output, shape index: {1}]  }
   0x1   :  { %626 = vset.pattern.permute.xlu0 %v636_v0  ;;  %v36_v1 = vld [vmem:[%s904_s2] sm:$0xff]  ;;  %627 = vset.pattern.permute.xlu1 %v636_v0  ;;  %v38_v2 = vld [vmem:[%s904_s2 + $0x10] sm:$0xff]  ;;  %v37_v4 = vld [vmem:[%s904_s2 + $0x8] sm:$0xff] }
   0x2   :  { %42 = vperm.xlu0 %626, %v36_v1   ;;  %52 = vperm.xlu1 %627, %v38_v2   ;;  %v28_v3 = vld [vmem:[%s905_s0] sm:$0xff]  ;;  %v39_v5 = vld [vmem:[%s904_s2 + $0x18] sm:$0xff]  ;;  %v700_v6 = vld [vmem:[%s905_s0 + $0x8] sm:$0xff] }
   0x3   :  { %276 = vmatprep.mubr.f32.mxu1 %v28_v3  ;;  %v553_v7 = vpack.c.bf16 %v700_v6, %v28_v3  ;;  %v706_v8 = vld [vmem:[%s905_s0 + $0x10] sm:$0xff]  ;;  %v711_v9 = vld [vmem:[%s905_s0 + $0x18] sm:$0xff]  ;;  %v189_v11 = vld [vmem:[%s906_s4 + $0x80] sm:$0xff] }
   0x4   :  { %v557_v10 = vpack.c.bf16 %v711_v9, %v706_v8  ;;  %v190_v12 = vld [vmem:[%s906_s4 + $0x88] sm:$0xff]  ;;  %v173_v13 = vld [vmem:[%s906_s4] sm:$0xff]  ;;  %v191_v16 = vld [vmem:[%s906_s4 + $0x90] sm:$0xff] }
   0x5   :  { %554 = vmatprep.subr.bf16.mxu0 %v553_v7  ;;  %v561_v14 = vpack.c.bf16 %v190_v12, %v189_v11  ;;  %v174_v15 = vld [vmem:[%s906_s4 + $0x8] sm:$0xff]  ;;  %v192_v17 = vld [vmem:[%s906_s4 + $0x98] sm:$0xff]  ;;  %v175_v20 = vld [vmem:[%s906_s4 + $0x10] sm:$0xff] }
   0x6   :  { %47 = vperm.xlu0 %626, %v37_v4   ;;  %57 = vperm.xlu1 %627, %v39_v5   ;;  %v563_v18 = vpack.c.bf16 %v174_v15, %v173_v13  ;;  %v565_v19 = vpack.c.bf16 %v192_v17, %v191_v16  ;;  %v176_v21 = vld [vmem:[%s906_s4 + $0x18] sm:$0xff]  ;;  %v193_v22 = vld [vmem:[%s906_s4 + $0xa0] sm:$0xff]  ;;  %v194_v23 = vld [vmem:[%s906_s4 + $0xa8] sm:$0xff] }
   0x7   :  { %556 = vmatpush3.bf16.msra.mxu0 %v553_v7  ;;  %562 = vmatprep.subr.bf16.mxu1 %v561_v14  ;;  %v567_v24 = vpack.c.bf16 %v176_v21, %v175_v20  ;;  %v569_v25 = vpack.c.bf16 %v194_v23, %v193_v22  ;;  %v177_v26 = vld [vmem:[%s906_s4 + $0x20] sm:$0xff]  ;;  %v178_v27 = vld [vmem:[%s906_s4 + $0x28] sm:$0xff]  ;;  %v195_v28 = vld [vmem:[%s906_s4 + $0xb0] sm:$0xff] }
   0x8   :  { %558 = vmatprep.subr.bf16.mxu0 %v557_v10  ;;  %564 = vmatpush3.bf16.msra.mxu1 %v563_v18  ;;  %v196_v29 = vld [vmem:[%s906_s4 + $0xb8] sm:$0xff]  ;;  %v571_v30 = vpack.c.bf16 %v178_v27, %v177_v26  ;;  %v179_v32 = vld [vmem:[%s906_s4 + $0x30] sm:$0xff]  ;;  %v197_v34 = vld [vmem:[%s906_s4 + $0xc0] sm:$0xff] }
   0x9   :  { %566 = vmatprep.subr.bf16.mxu1 %v565_v19  ;;  %v573_v31 = vpack.c.bf16 %v196_v29, %v195_v28  ;;  %v180_v33 = vld [vmem:[%s906_s4 + $0x38] sm:$0xff]  ;;  %v198_v35 = vld [vmem:[%s906_s4 + $0xc8] sm:$0xff]  ;;  %v181_v38 = vld [vmem:[%s906_s4 + $0x40] sm:$0xff] }
   0xa   :  { %v575_v36 = vpack.c.bf16 %v180_v33, %v179_v32  ;;  %v577_v37 = vpack.c.bf16 %v198_v35, %v197_v34  ;;  %v182_v39 = vld [vmem:[%s906_s4 + $0x48] sm:$0xff]  ;;  %v199_v40 = vld [vmem:[%s906_s4 + $0xd0] sm:$0xff]  ;;  %v200_v41 = vld [vmem:[%s906_s4 + $0xd8] sm:$0xff] }
   0xb   :  { %560 = vmatpush3.bf16.msra.mxu0 %v557_v10  ;;  %v579_v42 = vpack.c.bf16 %v182_v39, %v181_v38  ;;  %v581_v43 = vpack.c.bf16 %v200_v41, %v199_v40  ;;  %v183_v44 = vld [vmem:[%s906_s4 + $0x50] sm:$0xff]  ;;  %v184_v45 = vld [vmem:[%s906_s4 + $0x58] sm:$0xff]  ;;  %v201_v46 = vld [vmem:[%s906_s4 + $0xe0] sm:$0xff] }
   0xc   :  { %568 = vmatpush3.bf16.msra.mxu1 %v567_v24  ;;  %v202_v47 = vld [vmem:[%s906_s4 + $0xe8] sm:$0xff]  ;;  %v583_v48 = vpack.c.bf16 %v184_v45, %v183_v44  ;;  %v185_v50 = vld [vmem:[%s906_s4 + $0x60] sm:$0xff]  ;;  %v203_v52 = vld [vmem:[%s906_s4 + $0xf0] sm:$0xff] }
   0xd   :  { %570 = vmatprep.subr.bf16.mxu1 %v569_v25  ;;  %v585_v49 = vpack.c.bf16 %v202_v47, %v201_v46  ;;  %v186_v51 = vld [vmem:[%s906_s4 + $0x68] sm:$0xff]  ;;  %v204_v53 = vld [vmem:[%s906_s4 + $0xf8] sm:$0xff]  ;;  %v187_v56 = vld [vmem:[%s906_s4 + $0x70] sm:$0xff] }
   0xe   :  { %v587_v54 = vpack.c.bf16 %v186_v51, %v185_v50  ;;  %v589_v55 = vpack.c.bf16 %v204_v53, %v203_v52  ;;  %v188_v57 = vld [vmem:[%s906_s4 + $0x78] sm:$0xff]  ;;  %v32_v59 = vld [vmem:[%s907_s1] sm:$0xff]  ;;  %v34_v60 = vld [vmem:[%s907_s1 + $0x10] sm:$0xff] }
   0xf   :  { %v591_v58 = vpack.c.bf16 %v188_v57, %v187_v56  ;;  %v423_v62 = vld [vmem:[%s908_s3] ss:$0 sm:$0xff]  ;;  %v33_v2 = vld [vmem:[%s907_s1 + $0x8] sm:$0xff]  ;;  %v35_v3 = vld [vmem:[%s907_s1 + $0x18] sm:$0xff] }
  0x10   :  { %572 = vmatpush3.bf16.msra.mxu1 %v571_v30  ;;  %v305_v15 = vld [vmem:[%s909_s6] sm:$0xff]  ;;  %v306_v16 = vld [vmem:[%s909_s6 + $0x8] sm:$0xff]  ;;  %v307_v17 = vld [vmem:[%s909_s6 + $0x10] sm:$0xff] }
  0x11   :  { %574 = vmatprep.subr.bf16.mxu1 %v573_v31  ;;  %v593_v18 = vpack.c.bf16 %v306_v16, %v305_v15  ;;  %v308_v19 = vld [vmem:[%s909_s6 + $0x18] sm:$0xff]  ;;  %v309_v21 = vld [vmem:[%s909_s6 + $0x20] sm:$0xff]  ;;  %v310_v22 = vld [vmem:[%s909_s6 + $0x28] sm:$0xff] }
  0x12   :  { %v597_v20 = vpack.c.bf16 %v308_v19, %v307_v17  ;;  %v601_v23 = vpack.c.bf16 %v310_v22, %v309_v21  ;;  %v311_v24 = vld [vmem:[%s909_s6 + $0x30] sm:$0xff]  ;;  %v312_v25 = vld [vmem:[%s909_s6 + $0x38] sm:$0xff]  ;;  %v313_v27 = vld [vmem:[%s909_s6 + $0x40] sm:$0xff] }
  0x13   :  { %594 = vmatprep.subr.bf16.mxu0 %v593_v18  ;;  %v605_v26 = vpack.c.bf16 %v312_v25, %v311_v24  ;;  %v314_v28 = vld [vmem:[%s909_s6 + $0x48] sm:$0xff]  ;;  %v315_v34 = vld [vmem:[%s909_s6 + $0x50] sm:$0xff]  ;;  %v316_v35 = vld [vmem:[%s909_s6 + $0x58] sm:$0xff] }
  0x14   :  { %576 = vmatpush3.bf16.msra.mxu1 %v575_v36  ;;  %v609_v29 = vpack.c.bf16 %v314_v28, %v313_v27  ;;  %v613_v36 = vpack.c.bf16 %v316_v35, %v315_v34  ;;  %v320_v38 = vld [vmem:[%s909_s6 + $0x78] sm:$0xff]  ;;  %v428_v41 = vld [vmem:[%s910_s5] ss:$0 sm:$0xff] }
  0x15   :  { %578 = vmatprep.subr.bf16.mxu1 %v577_v37  ;;  %v319_v37 = vld [vmem:[%s909_s6 + $0x70] sm:$0xff] }
  0x16   :  { %v621_v39 = vpack.c.bf16 %v320_v38, %v319_v37 }
  0x18   :  { %580 = vmatpush3.bf16.msra.mxu1 %v579_v42 }
  0x19   :  { %582 = vmatprep.subr.bf16.mxu1 %v581_v43 }
  0x1c   :  { %584 = vmatpush3.bf16.msra.mxu1 %v583_v48 }
  0x1d   :  { %586 = vmatprep.subr.bf16.mxu1 %v585_v49 }
  0x20   :  { %588 = vmatpush3.bf16.msra.mxu1 %v587_v54 }
  0x21   :  { %590 = vmatprep.subr.bf16.mxu1 %v589_v55 }
  0x24   :  { %592 = vmatpush3.bf16.msra.mxu1 %v591_v58 }
  0x81   :  { %v43_v61 = vpop.permute.xlu0 %42  ;;  %v53_v63 = vpop.permute.xlu1 %52 }
  0x82   :  { %v60_v0 = vmul.f32 %v43_v61, %v32_v59  ;;  %v62_v1 = vmul.f32 %v53_v63, %v34_v60 }
  0x84   :  { %v71_v4 = vmul.f32 %v423_v62, %v60_v0  ;;  %v73_v12 = vmul.f32 %v423_v62, %v62_v1 }
  0x85   :  { %v48_v5 = vpop.permute.xlu0 %47  ;;  %v58_v7 = vpop.permute.xlu1 %57 }
  0x86   :  { %v61_v10 = vmul.f32 %v48_v5, %v33_v2  ;;  %509 = vmatprep.mubr.msk.f32.mxu0 %vm75_vm0, %v71_v4  ;;  %v63_v11 = vmul.f32 %v58_v7, %v35_v3 }
  0x88   :  { %v72_v13 = vmul.f32 %v423_v62, %v61_v10  ;;  %v74_v14 = vmul.f32 %v423_v62, %v63_v11 }
  0x8a   :  { %510 = vmatmul.mubr.msk.f32.vlgmr.msra.gmra.mrb[0].mxu0 %vm75_vm0, %v72_v13 }
  0x8b   :  { %512 = vmatprep.mubr.msk.f32.mxu0 %vm75_vm0, %v73_v12  ;;  %596 = vmatpush3.bf16.msra.mxu0 %v593_v18 }
  0x8c   :  { %598 = vmatprep.subr.bf16.mxu0 %v597_v20 }
  0x8e   :  { %513 = vmatmul.mubr.msk.f32.gmra.mrb[2].mxu0 %vm75_vm0, %v74_v14 }
  0x8f   :  { %600 = vmatpush3.bf16.msra.mxu0 %v597_v20 }
  0x90   :  { %602 = vmatprep.subr.bf16.mxu0 %v601_v23 }
  0x93   :  { %604 = vmatpush3.bf16.msra.mxu0 %v601_v23 }
  0x94   :  { %606 = vmatprep.subr.bf16.mxu0 %v605_v26 }
  0x97   :  { %608 = vmatpush3.bf16.msra.mxu0 %v605_v26 }
  0x98   :  { %610 = vmatprep.subr.bf16.mxu0 %v609_v29 }
  0x9b   :  { %612 = vmatpush3.bf16.msra.mxu0 %v609_v29 }
  0x9c   :  { %614 = vmatprep.subr.bf16.mxu0 %v613_v36 }
  0x9f   :  { %616 = vmatpush3.bf16.msra.mxu0 %v613_v36 }
 0x15d   :  { %v511_v30 = vpop.f32.mrb[0].mxu0 }
 0x15e   :  { %v154_v31 = vpop.f32.mrb[1].mxu0 }
 0x15f   :  { %277 = vmatmul.mubr.f32.vlgmr.msra.gmra.mrb[0].mxu1 %v154_v31 }
 0x160   :  { %281 = vmatprep.mubr.f32.mxu1 %v700_v6  ;;  %v317_v6 = vld [vmem:[%s909_s6 + $0x60] sm:$0xff] }
 0x161   :  { %v514_v32 = vpop.f32.mrb[2].mxu0 }
 0x162   :  { %v164_v33 = vpop.f32.mrb[3].mxu0 }
 0x163   :  { %282 = vmatmul.mubr.f32.gmra.mrb[2].mxu1 %v511_v30 }
 0x164   :  { %286 = vmatprep.mubr.f32.mxu1 %v706_v8  ;;  %v318_v8 = vld [vmem:[%s909_s6 + $0x68] sm:$0xff] }
 0x167   :  { %287 = vmatmul.mubr.f32.gmra.mrb[4].mxu1 %v164_v33 }
 0x168   :  { %291 = vmatprep.mubr.f32.mxu1 %v711_v9  ;;  %v617_v9 = vpack.c.bf16 %v318_v8, %v317_v6 }
 0x16a   :  { %618 = vmatprep.subr.bf16.mxu0 %v617_v9 }
 0x16b   :  { %292 = vmatmul.mubr.f32.gmra.mrb[6].mxu1 %v514_v32  ;;  %620 = vmatpush3.bf16.msra.mxu0 %v617_v9 }
 0x16c   :  { %622 = vmatprep.subr.bf16.mxu0 %v621_v39 }
 0x16f   :  { %624 = vmatpush3.bf16.msra.mxu0 %v621_v39 }
 0x232   :  { %v469_v40 = vpop.f32.mrb[0].mxu1 }
 0x233   :  { %v470_v42 = vpop.f32.mrb[1].mxu1 }
 0x234   :  { %v471_v43 = vadd.f32 %v470_v42, %v469_v40 }
 0x236   :  { %v279_v44 = vadd.f32 %v471_v43, %v428_v41  ;;  %v472_v45 = vpop.f32.mrb[2].mxu1 }
 0x237   :  { %v473_v46 = vpop.f32.mrb[3].mxu1 }
 0x238   :  { %v297_v47 = vmax.f32 %v279_v44, 0.0  ;;  %v474_v48 = vadd.f32 %v473_v46, %v472_v45 }
 0x23a   :  { %301 = vst [vmem:[%s911_s7] sm:$0xff] %v297_v47  ;;  %v284_v49 = vadd.f32 %v474_v48, %v428_v41  ;;  %v475_v50 = vpop.f32.mrb[4].mxu1  ;;  %547 = vmatprep.mubr.f32.mxu0 %v297_v47 }
 0x23b   :  { %v476_v51 = vpop.f32.mrb[5].mxu1 }
 0x23c   :  { %v298_v52 = vmax.f32 %v284_v49, 0.0  ;;  %v477_v53 = vadd.f32 %v476_v51, %v475_v50 }
 0x23e   :  { %302 = vst [vmem:[%s911_s7 + $0x8] sm:$0xff] %v298_v52  ;;  %v289_v54 = vadd.f32 %v477_v53, %v428_v41  ;;  %v478_v55 = vpop.f32.mrb[6].mxu1  ;;  %548 = vmatmul.mubr.f32.vlgmr.msra.gmra.mrb[4].mxu0 %v298_v52 }
 0x23f   :  { %v479_v56 = vpop.f32.mrb[7].mxu1 }
 0x240   :  { %v299_v57 = vmax.f32 %v289_v54, 0.0  ;;  %v480_v58 = vadd.f32 %v479_v56, %v478_v55 }
 0x242   :  { %303 = vst [vmem:[%s911_s7 + $0x10] sm:$0xff] %v299_v57  ;;  %v294_v59 = vadd.f32 %v480_v58, %v428_v41  ;;  %550 = vmatprep.mubr.f32.mxu0 %v299_v57 }
 0x244   :  { %v300_v60 = vmax.f32 %v294_v59, 0.0 }
 0x246   :  { %304 = vst [vmem:[%s911_s7 + $0x18] sm:$0xff] %v300_v60  ;;  %551 = vmatmul.mubr.f32.gmra.mrb[6].mxu0 %v300_v60 }
 0x311   :  { %v549_v61 = vpop.f32.mrb[4].mxu0 }
 0x312   :  { %628 = vtanh.f32 %v549_v61  ;;  %v387_v62 = vpop.f32.mrb[5].mxu0 }
 0x313   :  { %630 = vtanh.f32 %v387_v62 }
 0x319   :  { %v552_v63 = vpop.f32.mrb[6].mxu0 }
 0x31a   :  { %632 = vtanh.f32 %v552_v63  ;;  %v397_v0 = vpop.f32.mrb[7].mxu0 }
 0x31b   :  { %634 = vtanh.f32 %v397_v0 }
 0x31c   :  { %v629_v1 = vpop.eup %628 }
 0x31d   :  { %v631_v2 = vpop.eup %630  ;;  %412 = vst.msk [vmem:[%s912_s8 + $0x8] sm:$0xff] %vm410_vm1, %v629_v1 }
 0x31e   :  { %411 = vst.msk [vmem:[%s912_s8] sm:$0xff] %vm410_vm1, %v631_v2 }
 0x324   :  { %v633_v3 = vpop.eup %632 }
 0x325   :  { %v635_v4 = vpop.eup %634  ;;  %414 = vst.msk [vmem:[%s912_s8 + $0x18] sm:$0xff] %vm410_vm1, %v633_v3 }
 0x326   :  { %413 = vst.msk [vmem:[%s912_s8 + $0x10] sm:$0xff] %vm410_vm1, %v635_v4 }

// kernel: forward.12
= control target key start
LH: loop header
LB: loop body
LE: loop exit
PB: predicated region body
PF: predicated region fallthrough
CT: control target
= control target key end

     0   :  { %vm123_vm0 = vcmask 7168   ;;  %v281_v2 = vmov 0   ;;  %s369_s0 = inlined_call_operand.vmem [shape: f32[2,16,128], index: 0, kind: input, shape index: {}]   ;;  %s370_s1 = inlined_call_operand.vmem [shape: f32[2,16,1], index: 1, kind: input, shape index: {}]   ;;  %s371_s2 = inlined_call_operand.vmem [shape: f32[2,16,1], index: 2, kind: input, shape index: {}]   ;;  %s372_s3 = inlined_call_operand.hbm [shape: f32[2,16,128], index: 3, kind: output, shape index: {0}]   ;;  %s373_s4 = inlined_call_operand.vmem [shape: f32[2,256], index: 4, kind: output, shape index: {1}]  }
   0x1   :  { %v23_v0 = vld [vmem:[%s370_s1 + $0x10] sm:$0xff]  ;;  %v21_v1 = vld [vmem:[%s370_s1] sm:$0xff]  ;;  %252 = vset.pattern.permute.xlu1 %v281_v2  ;;  %251 = vset.pattern.permute.xlu0 %v281_v2  ;;  %v28_v4 = vld [vmem:[%s371_s2 + $0x18] sm:$0xff] }
   0x2   :  { %v27_v3 = vld [vmem:[%s371_s2 + $0x10] sm:$0xff]  ;;  %41 = vperm.xlu0 %251, %v23_v0   ;;  %31 = vperm.xlu1 %252, %v21_v1   ;;  %v134_v6 = vsel %vm123_vm0, %v28_v4, 0.0  ;;  %v25_v7 = vld [vmem:[%s371_s2] sm:$0xff]  ;;  %v26_v8 = vld [vmem:[%s371_s2 + $0x8] sm:$0xff] }
   0x3   :  { %v133_v5 = vsel %vm123_vm0, %v27_v3, 0.0  ;;  %v24_v9 = vld [vmem:[%s370_s1 + $0x18] sm:$0xff]  ;;  %v22_v10 = vld [vmem:[%s370_s1 + $0x8] sm:$0xff]  ;;  %v124_v12 = vsel %vm123_vm0, %v25_v7, 0.0  ;;  %v125_v13 = vsel %vm123_vm0, %v26_v8, 0.0 }
   0x4   :  { %v135_v11 = vadd.f32 %v134_v6, %v133_v5  ;;  %v126_v14 = vadd.f32 %v125_v13, %v124_v12 }
   0x5   :  { %10 = vsyncpa [#allocation3], 0  ;;  %vm83_vm1 = vcmp.gt.f32.partialorder %v27_v3, 0.0  ;;  %vm84_vm2 = vcmp.gt.f32.partialorder %v28_v4, 0.0  ;;  %vm81_vm3 = vcmp.gt.f32.partialorder %v25_v7, 0.0  ;;  %vm82_vm4 = vcmp.gt.f32.partialorder %v26_v8, 0.0 }
   0x6   :  { %v136_v15 = vrot.slane %v135_v11, 4  ;;  %46 = vperm.xlu0 %251, %v24_v9   ;;  %36 = vperm.xlu1 %252, %v22_v10   ;;  %v127_v16 = vrot.slane %v126_v14, 4  ;;  %v87_v26 = vsel %vm83_vm1, 1, %v281_v2  ;;  %v88_v27 = vsel %vm84_vm2, 1, %v281_v2  ;;  %v19_v35 = vld [vmem:[%s369_s0 + $0x10] sm:$0xff]  ;;  %v20_v37 = vld [vmem:[%s369_s0 + $0x18] sm:$0xff] }
   0x7   :  { %v85_v29 = vsel %vm81_vm3, 1, %v281_v2  ;;  %v86_v30 = vsel %vm82_vm4, 1, %v281_v2  ;;  %v17_v41 = vld [vmem:[%s369_s0] sm:$0xff]  ;;  %v18_v42 = vld [vmem:[%s369_s0 + $0x8] sm:$0xff]  ;;  %s282_s11 = smov [#allocation2]   ;;  %v175_v60 = vlaneseq }
   0x8   :  { %v137_v17 = vadd.f32 %v136_v15, %v135_v11  ;;  %v128_v18 = vadd.f32 %v127_v16, %v126_v14  ;;  %s231_s12 = sshll.u32 %s282_s11, 4  ;;  %v283_v58 = vmov 1983009808   ;;  %s232_s12 = int_to_ptr.vmem [resolvable:$true] %s231_s12 }
   0x9   :  { %v173_v59 = vunpack.c.l.s4 %v283_v58  ;;  %s257_s0 = scalar_lea.vmem %s232_s12, 512  ;;  %p262_p1 = scmp.lt.s32.totalorder %s232_s12, %s232_s12 }
   0xa   :  { %v138_v19 = vrot.slane %v137_v17, 2  ;;  %65 = vperm.xlu0 %251, %v27_v3   ;;  %70 = vperm.xlu1 %252, %v28_v4   ;;  %v129_v20 = vrot.slane %v128_v18, 2  ;;  %p258_p0 = scmp.ne.s32.totalorder %s232_s12, %s257_s0  ;;  %p263_p2 = scmp.lt.s32.totalorder %s257_s0, %s257_s0 }
   0xc   :  { %v139_v21 = vadd.f32 %v138_v19, %v137_v17  ;;  %v130_v22 = vadd.f32 %v129_v20, %v128_v18  ;;  %p264_p3 = por %p263_p2, %p262_p1 }
   0xe   :  { %v140_v23 = vrot.slane %v139_v21, 1  ;;  %55 = vperm.xlu0 %251, %v25_v7   ;;  %v131_v24 = vrot.slane %v130_v22, 1  ;;  %60 = vperm.xlu1 %252, %v26_v8   ;;  %p265_p4 = pnand %p264_p3, %p258_p0 }
  0x10   :  { %v141_v25 = vadd.f32 %v140_v23, %v139_v21  ;;  %v132_v28 = vadd.f32 %v131_v24, %v130_v22 }
  0x12   :  { %253 = vrcp.f32 %v141_v25  ;;  %96 = vperm.xlu0 %251, %v87_v26   ;;  %99 = vperm.xlu1 %252, %v88_v27  }
  0x13   :  { %255 = vrcp.f32 %v132_v28 }
  0x16   :  { %90 = vperm.xlu0 %251, %v85_v29   ;;  %93 = vperm.xlu1 %252, %v86_v30  }
  0x1c   :  { %v254_v31 = vpop.eup %253 }
  0x1d   :  { %v256_v32 = vpop.eup %255  ;;  %165 = vperm.xlu0 %251, %v254_v31  }
  0x1e   :  { %160 = vperm.xlu1 %252, %v256_v32  }
  0x81   :  { %v42_v33 = vpop.permute.xlu0 %41  ;;  %v32_v34 = vpop.permute.xlu1 %31 }
  0x82   :  { %v51_v39 = vmul.f32 %v42_v33, %v19_v35  ;;  %v49_v47 = vmul.f32 %v32_v34, %v17_v41 }
  0x85   :  { %v47_v36 = vpop.permute.xlu0 %46  ;;  %v37_v38 = vpop.permute.xlu1 %36 }
  0x86   :  { %v52_v40 = vmul.f32 %v47_v36, %v20_v37  ;;  %v50_v48 = vmul.f32 %v37_v38, %v18_v42 }
  0x89   :  { %v66_v43 = vpop.permute.xlu0 %65  ;;  %v71_v44 = vpop.permute.xlu1 %70 }
  0x8a   :  { %v75_v45 = vmul.f32 %v66_v43, %v51_v39  ;;  %v76_v46 = vmul.f32 %v71_v44, %v52_v40 }
  0x8c   :  { %79 = vst [vmem:[#allocation2 + $0x10] sm:$0xff] %v75_v45  ;;  %80 = vst [vmem:[#allocation2 + $0x18] sm:$0xff] %v76_v46  ;;  %v149_v49 = vadd.f32 %v76_v46, %v75_v45 }
  0x8d   :  { %v56_v50 = vpop.permute.xlu0 %55  ;;  %v61_v51 = vpop.permute.xlu1 %60 }
  0x8e   :  { %v150_v52 = vrot.slane %v149_v49, 4  ;;  %v73_v53 = vmul.f32 %v56_v50, %v49_v47  ;;  %v74_v54 = vmul.f32 %v61_v51, %v50_v48 }
  0x90   :  { %77 = vst [vmem:[#allocation2] sm:$0xff] %v73_v53  ;;  %78 = vst [vmem:[#allocation2 + $0x8] sm:$0xff] %v74_v54  ;;  %v142_v55 = vadd.f32 %v74_v54, %v73_v53  ;;  %v151_v56 = vadd.f32 %v150_v52, %v149_v49 }
  0x91   :  { %v97_v57 = vpop.permute.xlu0 %96  ;;  %v100_v61 = vpop.permute.xlu1 %99 }
  0x92   :  { %268 = shalt.err (!%p265_p4)
}
  0x93   :  { %s269_s15 = scalar_lea.hbm %s372_s3, 512 }
  0x94   :  { %p270_p5 = scmp.ne.s32.totalorder %s372_s3, %s269_s15  ;;  %p273_p6 = scmp.lt.u32.totalorder %s269_s15, %s372_s3 }
  0x96   :  { %p275_p7 = pnand %p273_p6, %p270_p5 }
  0x98   :  { %278 = shalt.err (!%p275_p7)
}
  0x99   :  { %s284_s20 = smov 128   ;;  %s285_s21 = smov 8   ;;  %v143_v62 = vrot.slane %v142_v55, 4  ;;  %vm103_vm5 = vcmp.eq.s32.totalorder %v97_v57, 1  ;;  %vm104_vm6 = vcmp.eq.s32.totalorder %v100_v61, 1  ;;  %v152_v63 = vrot.slane %v151_v56, 2  ;;  %v91_v7 = vpop.permute.xlu0 %90  ;;  %v94_v8 = vpop.permute.xlu1 %93 }
  0x9a   :  { %237 = dma.vmem_to_hbm [thread:$0]  %s232_s12, 512, %s372_s3, [#allocation3], %s284_s20, %s284_s20, %s285_s21   ;;  %v107_v0 = vsel %vm103_vm5, %v75_v45, -1e+30  ;;  %v108_v1 = vsel %vm104_vm6, %v76_v46, -1e+30  ;;  %v174_v5 = vunpack.c.0.s8 %v173_v59 }
  0x9b   :  { %v116_v2 = vmax.f32 %v107_v0, %v108_v1  ;;  %v153_v3 = vadd.f32 %v152_v63, %v151_v56  ;;  %v144_v4 = vadd.f32 %v143_v62, %v142_v55  ;;  %v176_v6 = vshrl.u32 %v175_v60, 7 }
  0x9c   :  { %vm101_vm7 = vcmp.eq.s32.totalorder %v91_v7, 1  ;;  %vm102_vm8 = vcmp.eq.s32.totalorder %v94_v8, 1  ;;  %vm191_vm9 = vcmask 1041409   ;;  %vm193_vm10 = vcmask 1043459  }
  0x9d   :  { %v117_v9 = vrot.slane %v116_v2, 4  ;;  %v154_v10 = vrot.slane %v153_v3, 1  ;;  %v105_v11 = vsel %vm101_vm7, %v73_v53, -1e+30  ;;  %v106_v12 = vsel %vm102_vm8, %v74_v54, -1e+30  ;;  %v166_v21 = vpop.permute.xlu0 %165  ;;  %v161_v30 = vpop.permute.xlu1 %160 }
  0x9e   :  { %v145_v13 = vrot.slane %v144_v4, 2  ;;  %v109_v15 = vmax.f32 %v105_v11, %v106_v12  ;;  %v177_v18 = vsub.s32 %v174_v5, %v176_v6  ;;  %vm195_vm11 = vcmask 1045509  }
  0x9f   :  { %v118_v14 = vmax.f32 %v116_v2, %v117_v9  ;;  %v155_v16 = vadd.f32 %v154_v10, %v153_v3  ;;  %vm197_vm12 = vcmask 1047559  }
  0xa0   :  { %v146_v17 = vadd.f32 %v145_v13, %v144_v4  ;;  %v110_v20 = vrot.slane %v109_v15, 4 }
  0xa1   :  { %v119_v19 = vrot.slane %v118_v14, 2  ;;  %v169_v25 = vmul.f32 %v166_v21, %v155_v16 }
  0xa2   :  { %v147_v22 = vrot.slane %v146_v17, 1  ;;  %v111_v24 = vmax.f32 %v109_v15, %v110_v20 }
  0xa3   :  { %v120_v23 = vmax.f32 %v118_v14, %v119_v19  ;;  %v216_v29 = vrot.slane %v169_v25, %v177_v18 }
  0xa4   :  { %v148_v26 = vadd.f32 %v147_v22, %v146_v17  ;;  %v112_v28 = vrot.slane %v111_v24, 2 }
  0xa5   :  { %v121_v27 = vrot.slane %v120_v23, 1  ;;  %v219_v34 = vrot.slane %v216_v29, 7 }
  0xa6   :  { %v168_v31 = vmul.f32 %v161_v30, %v148_v26  ;;  %v113_v33 = vmax.f32 %v111_v24, %v112_v28 }
  0xa7   :  { %v122_v32 = vmax.f32 %v120_v23, %v121_v27 }
  0xa8   :  { %v209_v35 = vrot.slane %v168_v31, %v177_v18  ;;  %v114_v37 = vrot.slane %v113_v33, 1 }
  0xa9   :  { %v185_v36 = vrot.slane %v122_v32, %v177_v18 }
  0xaa   :  { %v220_v38 = vsel %vm191_vm9, %v219_v34, %v209_v35  ;;  %v115_v39 = vmax.f32 %v113_v33, %v114_v37 }
  0xab   :  { %v221_v40 = vsel %vm193_vm10, %v219_v34, %v220_v38  ;;  %v190_v42 = vrot.slane %v185_v36, 7 }
  0xac   :  { %v222_v41 = vsel %vm195_vm11, %v219_v34, %v221_v40  ;;  %v178_v43 = vrot.slane %v115_v39, %v177_v18 }
  0xad   :  { %v223_v44 = vsel %vm197_vm12, %v219_v34, %v222_v41 }
  0xae   :  { %225 = vst [vmem:[%s373_s4 + $0x2] sm:$0x3] %v223_v44  ;;  %v192_v45 = vsel %vm191_vm9, %v190_v42, %v178_v43 }
  0xaf   :  { %v194_v46 = vsel %vm193_vm10, %v190_v42, %v192_v45 }
  0xb0   :  { %v196_v47 = vsel %vm195_vm11, %v190_v42, %v194_v46 }
  0xb1   :  { %v198_v48 = vsel %vm197_vm12, %v190_v42, %v196_v47 }
  0xb2   :  { %200 = vst [vmem:[%s373_s4] sm:$0x3] %v198_v48 }
  0xb3   :  { %279 = dma.done.wait [#allocation3], 512  }
  0xb4   :  { %280 = vsyncadd [#allocation3], 4294966784 }
  0xb5   :  { %245 = vsyncpa [#allocation3], 1 }

// kernel: forward.13
= control target key start
LH: loop header
LB: loop body
LE: loop exit
PB: predicated region body
PF: predicated region fallthrough
CT: control target
= control target key end

     0   :  { %s709_s0 = inlined_call_operand.vmem [shape: f32[2,256], index: 0, kind: input, shape index: {}]   ;;  %s710_s1 = inlined_call_operand.vmem [shape: f32[256,32], index: 1, kind: input, shape index: {}]   ;;  %s711_s2 = inlined_call_operand.vmem [shape: f32[1,32], index: 2, kind: input, shape index: {}]   ;;  %s712_s3 = inlined_call_operand.vmem [shape: f32[32,32], index: 3, kind: input, shape index: {}]   ;;  %s713_s4 = inlined_call_operand.vmem [shape: f32[1,32], index: 4, kind: input, shape index: {}]   ;;  %s714_s5 = inlined_call_operand.vmem [shape: f32[32,4], index: 5, kind: input, shape index: {}]   ;;  %s715_s6 = inlined_call_operand.vmem [shape: f32[1,4], index: 6, kind: input, shape index: {}]   ;;  %s716_s7 = inlined_call_operand.hbm [shape: f32[2,4], index: 7, kind: output, shape index: {}]  }
   0x1   :  { %v44_v0 = vld [vmem:[%s710_s1 + $0x80] sm:$0xff]  ;;  %v45_v1 = vld [vmem:[%s710_s1 + $0x88] sm:$0xff]  ;;  %v46_v5 = vld [vmem:[%s710_s1 + $0x90] sm:$0xff] }
   0x2   :  { %v28_v2 = vld [vmem:[%s710_s1] sm:$0xff]  ;;  %v430_v3 = vpack.c.bf16 %v45_v1, %v44_v0  ;;  %v29_v4 = vld [vmem:[%s710_s1 + $0x8] sm:$0xff]  ;;  %v47_v6 = vld [vmem:[%s710_s1 + $0x98] sm:$0xff] }
   0x3   :  { %v432_v7 = vpack.c.bf16 %v29_v4, %v28_v2  ;;  %v434_v8 = vpack.c.bf16 %v47_v6, %v46_v5  ;;  %v30_v9 = vld [vmem:[%s710_s1 + $0x10] sm:$0xff]  ;;  %v31_v10 = vld [vmem:[%s710_s1 + $0x18] sm:$0xff]  ;;  %v48_v11 = vld [vmem:[%s710_s1 + $0xa0] sm:$0xff] }
   0x4   :  { %431 = vmatprep.subr.bf16.mxu0 %v430_v3  ;;  %v49_v12 = vld [vmem:[%s710_s1 + $0xa8] sm:$0xff]  ;;  %v436_v13 = vpack.c.bf16 %v31_v10, %v30_v9  ;;  %v32_v15 = vld [vmem:[%s710_s1 + $0x20] sm:$0xff]  ;;  %v50_v17 = vld [vmem:[%s710_s1 + $0xb0] sm:$0xff] }
   0x5   :  { %433 = vmatpush3.bf16.msra.mxu0 %v432_v7  ;;  %v438_v14 = vpack.c.bf16 %v49_v12, %v48_v11  ;;  %v33_v16 = vld [vmem:[%s710_s1 + $0x28] sm:$0xff]  ;;  %v51_v18 = vld [vmem:[%s710_s1 + $0xb8] sm:$0xff]  ;;  %v34_v21 = vld [vmem:[%s710_s1 + $0x30] sm:$0xff] }
   0x6   :  { %435 = vmatprep.subr.bf16.mxu0 %v434_v8  ;;  %v440_v19 = vpack.c.bf16 %v33_v16, %v32_v15  ;;  %v442_v20 = vpack.c.bf16 %v51_v18, %v50_v17  ;;  %v35_v22 = vld [vmem:[%s710_s1 + $0x38] sm:$0xff]  ;;  %v52_v23 = vld [vmem:[%s710_s1 + $0xc0] sm:$0xff]  ;;  %v53_v24 = vld [vmem:[%s710_s1 + $0xc8] sm:$0xff] }
   0x7   :  { %v358_v25 = vld.sshfl [vmem:[%s709_s0] sm:$0x33 pattern:$0x76325410] }
   0x8   :  { %v75_v26 = vcombine.high %v358_v25, %v358_v25 }
   0x9   :  { %437 = vmatpush3.bf16.msra.mxu0 %v436_v13 }
   0xa   :  { %439 = vmatprep.subr.bf16.mxu0 %v438_v14 }
   0xb   :  { %12 = vsyncpa [#allocation3], 0  ;;  %v444_v27 = vpack.c.bf16 %v35_v22, %v34_v21  ;;  %v446_v28 = vpack.c.bf16 %v53_v24, %v52_v23  ;;  %v36_v29 = vld [vmem:[%s710_s1 + $0x40] sm:$0xff]  ;;  %v37_v30 = vld [vmem:[%s710_s1 + $0x48] sm:$0xff]  ;;  %142 = vmatprep.mubr.f32.mxu0 %v75_v26  ;;  %v514_v53 = vmov 0.0|0.0   ;;  %vm515_vm0 = vmmov 0  }
   0xc   :  { %v54_v31 = vld [vmem:[%s710_s1 + $0xd0] sm:$0xff]  ;;  %v55_v32 = vld [vmem:[%s710_s1 + $0xd8] sm:$0xff]  ;;  %v448_v33 = vpack.c.bf16 %v37_v30, %v36_v29  ;;  %v56_v37 = vld [vmem:[%s710_s1 + $0xe0] sm:$0xff]  ;;  %462 = vmatprep.subr.bf16.mxu1 %v514_v53  ;;  %v516_v57 = vmov 0.0   ;;  %vm165_vm1 = vcmask 261120   ;;  %vm329_vm2 = vcmask 25600  }
   0xd   :  { %441 = vmatpush3.bf16.msra.mxu0 %v440_v19  ;;  %v450_v34 = vpack.c.bf16 %v55_v32, %v54_v31  ;;  %v38_v35 = vld [vmem:[%s710_s1 + $0x50] sm:$0xff]  ;;  %v39_v36 = vld [vmem:[%s710_s1 + $0x58] sm:$0xff]  ;;  %v57_v38 = vld [vmem:[%s710_s1 + $0xe8] sm:$0xff]  ;;  %416 = vmatprep.mubr.msk.f32.mxu1 %vm515_vm0, %v516_v57 }
   0xe   :  { %443 = vmatprep.subr.bf16.mxu0 %v442_v20  ;;  %v452_v39 = vpack.c.bf16 %v39_v36, %v38_v35  ;;  %v454_v40 = vpack.c.bf16 %v57_v38, %v56_v37  ;;  %v40_v41 = vld [vmem:[%s710_s1 + $0x60] sm:$0xff]  ;;  %v41_v42 = vld [vmem:[%s710_s1 + $0x68] sm:$0xff]  ;;  %v58_v43 = vld [vmem:[%s710_s1 + $0xf0] sm:$0xff] }
   0xf   :  { %v59_v44 = vld [vmem:[%s710_s1 + $0xf8] sm:$0xff]  ;;  %v456_v45 = vpack.c.bf16 %v41_v42, %v40_v41  ;;  %v42_v47 = vld [vmem:[%s710_s1 + $0x70] sm:$0xff]  ;;  %v154_v50 = vld [vmem:[%s712_s3] sm:$0xff] }
  0x10   :  { %v458_v46 = vpack.c.bf16 %v59_v44, %v58_v43  ;;  %v43_v48 = vld [vmem:[%s710_s1 + $0x78] sm:$0xff]  ;;  %v155_v51 = vld [vmem:[%s712_s3 + $0x8] sm:$0xff]  ;;  %v156_v54 = vld [vmem:[%s712_s3 + $0x10] sm:$0xff] }
  0x11   :  { %445 = vmatpush3.bf16.msra.mxu0 %v444_v27  ;;  %v460_v49 = vpack.c.bf16 %v43_v48, %v42_v47  ;;  %v463_v52 = vpack.c.bf16 %v155_v51, %v154_v50  ;;  %v157_v55 = vld [vmem:[%s712_s3 + $0x18] sm:$0xff]  ;;  %v357_v59 = vld [vmem:[%s711_s2] ss:$0 sm:$0xff]  ;;  %v246_v6 = vld [vmem:[%s714_s5 + $0x8] sm:$0xff] }
  0x12   :  { %447 = vmatprep.subr.bf16.mxu0 %v446_v28  ;;  %v466_v56 = vpack.c.bf16 %v157_v55, %v156_v54  ;;  %v245_v5 = vld [vmem:[%s714_s5] sm:$0xff]  ;;  %v247_v8 = vld [vmem:[%s714_s5 + $0x10] sm:$0xff]  ;;  %v248_v9 = vld [vmem:[%s714_s5 + $0x18] sm:$0xff] }
  0x13   :  { %464 = vmatpush3.bf16.msra.mxu1 %v463_v52  ;;  %v469_v7 = vpack.c.bf16 %v246_v6, %v245_v5  ;;  %v472_v10 = vpack.c.bf16 %v248_v9, %v247_v8  ;;  %v359_v11 = vld [vmem:[%s713_s4] ss:$0 sm:$0xff]  ;;  %s517_s4 = smov [#allocation2]  }
  0x14   :  { %465 = vmatprep.subr.bf16.mxu1 %v514_v53  ;;  %v361_v21 = vld [vmem:[%s715_s6] ss:$0 sm:$0xff]  ;;  %s349_s6 = sshll.u32 %s517_s4, 4  ;;  %s350_s6 = int_to_ptr.vmem [resolvable:$true] %s349_s6 }
  0x15   :  { %449 = vmatpush3.bf16.msra.mxu0 %v448_v33  ;;  %s490_s14 = scalar_lea.vmem %s350_s6, 32  ;;  %p495_p1 = scmp.lt.s32.totalorder %s350_s6, %s350_s6 }
  0x16   :  { %451 = vmatprep.subr.bf16.mxu0 %v450_v34  ;;  %p491_p0 = scmp.ne.s32.totalorder %s350_s6, %s490_s14  ;;  %p496_p2 = scmp.lt.s32.totalorder %s490_s14, %s490_s14 }
  0x17   :  { %467 = vmatpush3.bf16.msra.mxu1 %v466_v56 }
  0x18   :  { %468 = vmatprep.subr.bf16.mxu1 %v514_v53  ;;  %p497_p3 = por %p496_p2, %p495_p1 }
  0x19   :  { %453 = vmatpush3.bf16.msra.mxu0 %v452_v39 }
  0x1a   :  { %455 = vmatprep.subr.bf16.mxu0 %v454_v40  ;;  %p498_p4 = pnand %p497_p3, %p491_p0 }
  0x1d   :  { %457 = vmatpush3.bf16.msra.mxu0 %v456_v45 }
  0x1e   :  { %459 = vmatprep.subr.bf16.mxu0 %v458_v46 }
  0x21   :  { %461 = vmatpush3.bf16.msra.mxu0 %v460_v49 }
  0x24   :  { %143 = vmatmul.mubr.f32.vlgmr.msra.gmra.mrb[0].mxu0 %v358_v25 }
  0xf7   :  { %v395_v58 = vpop.f32.mrb[0].mxu0 }
  0xf8   :  { %v396_v60 = vpop.f32.mrb[1].mxu0 }
  0xf9   :  { %v397_v61 = vadd.f32 %v396_v60, %v395_v58 }
  0xfb   :  { %v145_v62 = vadd.f32 %v397_v61, %v357_v59 }
  0xfd   :  { %v148_v63 = vsub.f32 0.0, %v145_v62 }
  0xff   :  { %v149_v0 = vmul.f32 1.442695, %v148_v63 }
 0x101   :  { %478 = vpow2.f32 %v149_v0 }
 0x10b   :  { %v479_v1 = vpop.eup %478 }
 0x10c   :  { %v151_v2 = vadd.f32 1.0, %v479_v1 }
 0x10e   :  { %480 = vrcp.f32 %v151_v2 }
 0x118   :  { %v481_v3 = vpop.eup %480 }
 0x119   :  { %v153_v4 = vmul.f32 %v481_v3, %v145_v62 }
 0x11b   :  { %417 = vmatmul.mubr.msk.f32.vlgmr.msra.gmra.mrb[0].mxu1 %vm165_vm1, %v153_v4 }
 0x11c   :  { %427 = vmatprep.mubr.msk.f32.mxu1 %vm515_vm0, %v516_v57  ;;  %470 = vmatpush3.bf16.msra.mxu1 %v469_v7 }
 0x11d   :  { %471 = vmatprep.subr.bf16.mxu1 %v514_v53 }
 0x120   :  { %473 = vmatpush3.bf16.msra.mxu1 %v472_v10 }
 0x1ee   :  { %v235_v12 = vpop.f32.mrb[0].mxu1 }
 0x1ef   :  { %v236_v13 = vadd.f32 %v359_v11, %v235_v12  ;;  %v418_v14 = vpop.f32.mrb[1].mxu1 }
 0x1f1   :  { %v239_v15 = vsub.f32 0.0, %v236_v13 }
 0x1f3   :  { %v240_v16 = vmul.f32 1.442695, %v239_v15 }
 0x1f5   :  { %482 = vpow2.f32 %v240_v16 }
 0x1ff   :  { %v483_v17 = vpop.eup %482 }
 0x200   :  { %v242_v18 = vadd.f32 1.0, %v483_v17 }
 0x202   :  { %484 = vrcp.f32 %v242_v18 }
 0x20c   :  { %v485_v19 = vpop.eup %484 }
 0x20d   :  { %v244_v20 = vmul.f32 %v485_v19, %v236_v13 }
 0x20f   :  { %428 = vmatmul.mubr.msk.f32.vlgmr.msra.gmra.mrb[2].mxu1 %vm165_vm1, %v244_v20 }
 0x2e2   :  { %v325_v22 = vpop.f32.mrb[2].mxu1 }
 0x2e3   :  { %v326_v23 = vadd.f32 %v361_v21, %v325_v22  ;;  %v429_v24 = vpop.f32.mrb[3].mxu1 }
 0x2e5   :  { %v330_v25 = vsel %vm329_vm2, %v326_v23, -inf }
 0x2e6   :  { %331 = vmax.xlane.f32.xlu0 %v330_v25 }
 0x373   :  { %v332_v26 = vpop.xlane.xlu0 %331 }
 0x374   :  { %v333_v27 = vsub.f32 %v326_v23, %v332_v26 }
 0x376   :  { %v334_v28 = vmul.f32 1.442695, %v333_v27 }
 0x378   :  { %486 = vpow2.f32 %v334_v28 }
 0x382   :  { %v487_v29 = vpop.eup %486 }
 0x383   :  { %v336_v30 = vsel %vm329_vm2, %v487_v29, 0.0 }
 0x384   :  { %337 = vadd.xlane.f32.xlu0 %v336_v30 }
 0x411   :  { %v338_v31 = vpop.xlane.xlu0 %337 }
 0x412   :  { %488 = vlog2.f32 %v338_v31 }
 0x41c   :  { %v489_v32 = vpop.eup %488 }
 0x41d   :  { %v340_v33 = vmul.f32 0.6931472, %v489_v32 }
 0x41f   :  { %v341_v34 = vsub.f32 %v333_v27, %v340_v33 }
 0x421   :  { %342 = vst.msk [vmem:[#allocation2] sm:$0x3] %vm329_vm2, %v341_v34 }
 0x422   :  { %501 = shalt.err (!%p498_p4)
}
 0x423   :  { %s502_s17 = scalar_lea.hbm %s716_s7, 32 }
 0x424   :  { %p503_p5 = scmp.ne.s32.totalorder %s716_s7, %s502_s17  ;;  %p506_p6 = scmp.lt.u32.totalorder %s502_s17, %s716_s7 }
 0x426   :  { %p508_p7 = pnand %p506_p6, %p503_p5 }
 0x428   :  { %511 = shalt.err (!%p508_p7)
}
 0x429   :  { %352 = dma.vmem_to_hbm [thread:$0]  %s350_s6, 32, %s716_s7, [#allocation3]  }
 0x42a   :  { %512 = dma.done.wait [#allocation3], 32  }
 0x42b   :  { %513 = vsyncadd [#allocation3], 4294967264 }
 0x42c   :  { %356 = vsyncpa [#allocation3], 1 }

</bundles_post_ra>
